<compile_context>
chip_gen: v7x
topology: tpu7x:2x2x1
jax: 0.10.0
libtpu: 0.0.40
codegen_flags: <defaults>
</compile_context>

<pallas_src>
import functools

import jax
import jax.numpy as jnp
from jax.experimental import pallas as pl
from jax.experimental.pallas import tpu as pltpu


def _layernorm(x, gamma, beta, eps):
    mu = jnp.mean(x, axis=-1, keepdims=True)
    var = jnp.mean((x - mu) ** 2, axis=-1, keepdims=True)
    return (x - mu) * jax.lax.rsqrt(var + eps) * gamma + beta


def _split_batch(x2, batch, seq):
    # (B*S, F) -> (B, S, F) via tile-aligned sublane slices + leading-dim stack (f32).
    return jnp.concatenate(
        [x2[b * seq:(b + 1) * seq][None] for b in range(batch)], axis=0)


def _merge_batch(x3, batch):
    # (B, S, F) -> (B*S, F): leading-dim index + sublane concat.
    return jnp.concatenate([x3[b] for b in range(batch)], axis=0)


def cross_attention_module_kernel(
    src_ref, tgt_ref, mask_ref,
    wq_ref, wkv_ref, wo_ref, bo_ref,
    g0_ref, beta0_ref, w1_ref, b1_ref, w2_ref, b2_ref,
    g1_ref, beta1_ref,
    out_ref,
    *, nlayers, heads, head_dim, batch, seq, eps):
    """All CrossAttentionLayers fused; whole batch processed in one invocation."""
    B, S, H, D = batch, seq, heads, head_dim
    E = H * D

    x = src_ref[...]                                    # (B*S, E) f32 running activations

    # ---- loop-invariant work (hoisted out of the layer loop) ------------------------
    # additive mask: int8 bool -> finite -1e30 (NaN-safe); same shape as the per-head
    # (B,S,S) scores, so no broadcast is needed inside the loop.
    neg = mask_ref[...].astype(jnp.float32) * jnp.float32(-1e30)          # (B,S,S)

    # K and V for ALL layers in one lane-dense matmul (tgt never changes):
    # (B*S,E) @ (E, 2*L*E), column layout [Wk_0 | Wv_0 | Wk_1 | Wv_1 | ...].
    kv = jnp.dot(tgt_ref[...], wkv_ref[...], preferred_element_type=jnp.float32)
    kv3 = _split_batch(kv, B, S).astype(jnp.bfloat16)                     # (B,S,2*L*E)

    for l in range(nlayers):                            # nlayers is small: static unroll
        # ---- Q projection: single full-width matmul (1/sqrt(E) folded into Wq) ------
        q = jnp.dot(x.astype(jnp.bfloat16), wq_ref[l],
                    preferred_element_type=jnp.float32)                   # (B*S, E)
        q3 = _split_batch(q, B, S).astype(jnp.bfloat16)                   # (B,S,E)

        # ---- per-head attention, batched over B -------------------------------------
        base = 2 * l * E
        ctx_heads = []
        for h in range(H):
            qh = q3[:, :, h * D:(h + 1) * D]                              # (B,S,D)
            kh = kv3[:, :, base + h * D: base + (h + 1) * D]              # (B,S,D)
            vh = kv3[:, :, base + E + h * D: base + E + (h + 1) * D]      # (B,S,D)
            s = jnp.einsum('bqd,bkd->bqk', qh, kh,
                           preferred_element_type=jnp.float32) + neg      # (B,S,S)
            s = s - jnp.max(s, axis=-1, keepdims=True)
            p = jnp.exp(s)
            p = p * pl.reciprocal(jnp.sum(p, axis=-1, keepdims=True), approx=True)
            ctx_heads.append(
                jnp.einsum('bqk,bkd->bqd', p.astype(jnp.bfloat16), vh,
                           preferred_element_type=jnp.float32))           # (B,S,D)

        # head concat + one (E,E) Wo dot == head reduction fused into the projection
        ctx = _merge_batch(jnp.concatenate(ctx_heads, axis=-1), B)        # (B*S, E)
        attn = jnp.dot(ctx.astype(jnp.bfloat16), wo_ref[l],
                       preferred_element_type=jnp.float32) + bo_ref[l]

        # ---- residual + LayerNorm 0 (dropout = identity in eval) --------------------
        x = _layernorm(x + attn, g0_ref[l], beta0_ref[l], eps)

        # ---- feed-forward: Linear -> ReLU -> Linear ----------------------------------
        h1 = jnp.maximum(
            jnp.dot(x.astype(jnp.bfloat16), w1_ref[l],
                    preferred_element_type=jnp.float32) + b1_ref[l], 0.0)
        ffn = jnp.dot(h1.astype(jnp.bfloat16), w2_ref[l],
                      preferred_element_type=jnp.float32) + b2_ref[l]

        # ---- residual + LayerNorm 1 ---------------------------------------------------
        x = _layernorm(x + ffn, g1_ref[l], beta1_ref[l], eps)

    # At production sizes keep E a multiple of 128 so this store is lane-dense; at E=32
    # the masked store of the 2 KiB output is negligible.
    out_ref[...] = x


def cross_attention_module(src, tgt, mask, params, *, heads, eps=1e-5):
    """src, tgt: (S, B, E) like the PyTorch reference.
    mask: None or bool broadcastable to (B, S, S) (True = masked), shared across heads.
    All layers fused into a single pallas_call; the batch is folded into sublanes."""
    S, B, E = src.shape
    L = params["wq"].shape[0]
    D = E // heads
    T = B * S

    # One transpose per module call on each side; batch folded into the token dim.
    src_t = jnp.transpose(src, (1, 0, 2)).reshape(T, E).astype(jnp.float32)
    tgt_t = jnp.transpose(tgt, (1, 0, 2)).reshape(T, E).astype(jnp.bfloat16)

    if mask is None:
        mask_i8 = jnp.zeros((B, S, S), jnp.int8)
    else:
        mask_i8 = jnp.broadcast_to(mask, (B, S, S)).astype(jnp.int8)

    # Fold the reference's 1/sqrt(embed_dim) score scale into Wq (free: param-prep time).
    wq = (params["wq"] * (1.0 / (E ** 0.5))).astype(jnp.bfloat16)         # (L,E,E)
    # K/V weights for all layers concatenated into one slab: [Wk_0|Wv_0|Wk_1|Wv_1|...].
    wkv = jnp.concatenate(
        [jnp.concatenate([params["wk"][l], params["wv"][l]], axis=-1) for l in range(L)],
        axis=-1).astype(jnp.bfloat16)                                     # (E, 2*L*E)
    wo = params["wo"].astype(jnp.bfloat16)                                # (L,E,E)
    w1 = params["w1"].astype(jnp.bfloat16)                                # (L,E,nhid)
    w2 = params["w2"].astype(jnp.bfloat16)                                # (L,nhid,E)

    def full(shape):
        nd = len(shape)
        return pl.BlockSpec(shape, lambda i, _nd=nd: (0,) * _nd)

    kernel = functools.partial(
        cross_attention_module_kernel,
        nlayers=L, heads=heads, head_dim=D, batch=B, seq=S, eps=eps)

    operands = (
        src_t, tgt_t, mask_i8, wq, wkv, wo,
        params["bo"], params["g0"], params["beta0"],
        w1, params["b1"], w2, params["b2"],
        params["g1"], params["beta1"],
    )

    # Single grid step: all layers fused, weights resident in VMEM (tiny at this size).
    # TODO(synk): at production sizes make L an 'arbitrary' grid axis (BlockSpecs indexed
    # by l) so layer l+1 weights stream while layer l computes — required on v7x's 64 MiB
    # VMEM; at this toy size a resident single step is strictly cheaper.
    out2 = pl.pallas_call(
        kernel,
        out_shape=jax.ShapeDtypeStruct((T, E), jnp.float32),
        grid=(1,),
        in_specs=[full(op.shape) for op in operands],
        out_specs=full((T, E)),
        compiler_params=pltpu.CompilerParams(
            dimension_semantics=("arbitrary",)),
    )(*operands)

    return jnp.transpose(out2.reshape(B, S, E), (1, 0, 2))                # back to (S,B,E)


def init_params(key, ninp, nhid, nlayers):
    """Deterministic synthetic parameters, stacked over layers, stored (in, out).

    Q/K/V linears have no bias (reference uses bias=False); the MultiheadAttention output
    linear and FFN linears have biases; LayerNorms start at gamma=1, beta=0."""
    E, L = ninp, nlayers
    ks = jax.random.split(key, 9)
    s = 0.05
    w = lambda k, shape: s * jax.random.normal(k, shape, jnp.float32)
    return {
        "wq": w(ks[0], (L, E, E)),
        "wk": w(ks[1], (L, E, E)),
        "wv": w(ks[2], (L, E, E)),
        "wo": w(ks[3], (L, E, E)),
        "bo": w(ks[4], (L, 1, E)),
        "g0": jnp.ones((L, 1, E), jnp.float32),
        "beta0": jnp.zeros((L, 1, E), jnp.float32),
        "w1": w(ks[5], (L, E, nhid)),
        "b1": w(ks[6], (L, 1, nhid)),
        "w2": w(ks[7], (L, nhid, E)),
        "b2": w(ks[8], (L, 1, E)),
        "g1": jnp.ones((L, 1, E), jnp.float32),
        "beta1": jnp.zeros((L, 1, E), jnp.float32),
    }


if __name__ == "__main__":
    # Small shapes consistent with the module: seq=8, batch=2, ninp=32, nhead=4, nhid=64,
    # nlayers=2.
    S, B, ninp, nhead, nhid, nlayers = 8, 2, 32, 4, 64, 2

    root = jax.random.PRNGKey(0)
    k_src, k_tgt, k_par = jax.random.split(root, 3)

    src = jax.random.normal(k_src, (S, B, ninp), jnp.float32)   # (seq, batch, embed)
    tgt = jax.random.normal(k_tgt, (S, B, ninp), jnp.float32)

    # boolean mask shared across heads: mask out the last two key positions everywhere.
    mask = jnp.zeros((B, S, S), bool).at[:, :, -2:].set(True)

    params = init_params(k_par, ninp, nhid, nlayers)

    out = cross_attention_module(src, tgt, mask, params, heads=nhead)
    out = jax.block_until_ready(out)
    assert out.shape == (S, B, ninp)
    assert bool(jnp.all(jnp.isfinite(out)))
    print("KERNEL_OK")
</pallas_src>

<mosaic_0001>
module attributes {stable_mosaic.version = 11 : i64} {
  func.func @cross_attention_module_kernel(%arg0: i32, %arg1: memref<16x32xf32, #tpu.memory_space<vmem>>, %arg2: memref<16x32xbf16, #tpu.memory_space<vmem>>, %arg3: memref<2x8x8xi8, #tpu.memory_space<vmem>>, %arg4: memref<2x32x32xbf16, #tpu.memory_space<vmem>>, %arg5: memref<32x128xbf16, #tpu.memory_space<vmem>>, %arg6: memref<2x32x32xbf16, #tpu.memory_space<vmem>>, %arg7: memref<2x1x32xf32, #tpu.memory_space<vmem>>, %arg8: memref<2x1x32xf32, #tpu.memory_space<vmem>>, %arg9: memref<2x1x32xf32, #tpu.memory_space<vmem>>, %arg10: memref<2x32x64xbf16, #tpu.memory_space<vmem>>, %arg11: memref<2x1x64xf32, #tpu.memory_space<vmem>>, %arg12: memref<2x64x32xbf16, #tpu.memory_space<vmem>>, %arg13: memref<2x1x32xf32, #tpu.memory_space<vmem>>, %arg14: memref<2x1x32xf32, #tpu.memory_space<vmem>>, %arg15: memref<2x1x32xf32, #tpu.memory_space<vmem>>, %arg16: memref<16x32xf32, #tpu.memory_space<vmem>>) attributes {dimension_semantics = [#tpu.dimension_semantics<arbitrary>], iteration_bounds = array<i64: 1>, scalar_prefetch = 0 : i64, scratch_operands = 0 : i64, tpu.core_type = #tpu.core_type<tc>, window_params = [{pipeline_mode = #tpu.pipeline_mode<synchronous>, transform_indices = @transform_0, window_bounds = array<i64: 16, 32>}, {pipeline_mode = #tpu.pipeline_mode<synchronous>, transform_indices = @transform_1, window_bounds = array<i64: 16, 32>}, {pipeline_mode = #tpu.pipeline_mode<synchronous>, transform_indices = @transform_2, window_bounds = array<i64: 2, 8, 8>}, {pipeline_mode = #tpu.pipeline_mode<synchronous>, transform_indices = @transform_3, window_bounds = array<i64: 2, 32, 32>}, {pipeline_mode = #tpu.pipeline_mode<synchronous>, transform_indices = @transform_4, window_bounds = array<i64: 32, 128>}, {pipeline_mode = #tpu.pipeline_mode<synchronous>, transform_indices = @transform_5, window_bounds = array<i64: 2, 32, 32>}, {pipeline_mode = #tpu.pipeline_mode<synchronous>, transform_indices = @transform_6, window_bounds = array<i64: 2, 1, 32>}, {pipeline_mode = #tpu.pipeline_mode<synchronous>, transform_indices = @transform_7, window_bounds = array<i64: 2, 1, 32>}, {pipeline_mode = #tpu.pipeline_mode<synchronous>, transform_indices = @transform_8, window_bounds = array<i64: 2, 1, 32>}, {pipeline_mode = #tpu.pipeline_mode<synchronous>, transform_indices = @transform_9, window_bounds = array<i64: 2, 32, 64>}, {pipeline_mode = #tpu.pipeline_mode<synchronous>, transform_indices = @transform_10, window_bounds = array<i64: 2, 1, 64>}, {pipeline_mode = #tpu.pipeline_mode<synchronous>, transform_indices = @transform_11, window_bounds = array<i64: 2, 64, 32>}, {pipeline_mode = #tpu.pipeline_mode<synchronous>, transform_indices = @transform_12, window_bounds = array<i64: 2, 1, 32>}, {pipeline_mode = #tpu.pipeline_mode<synchronous>, transform_indices = @transform_13, window_bounds = array<i64: 2, 1, 32>}, {pipeline_mode = #tpu.pipeline_mode<synchronous>, transform_indices = @transform_14, window_bounds = array<i64: 2, 1, 32>}, {pipeline_mode = #tpu.pipeline_mode<synchronous>, transform_indices = @transform_15, window_bounds = array<i64: 16, 32>}]} {
    %c0 = arith.constant 0 : index
    %c0_0 = arith.constant 0 : index
    %0 = vector.load %arg1[%c0, %c0_0] : memref<16x32xf32, #tpu.memory_space<vmem>>, vector<16x32xf32>
    %c0_1 = arith.constant 0 : index
    %c0_2 = arith.constant 0 : index
    %c0_3 = arith.constant 0 : index
    %1 = vector.load %arg3[%c0_1, %c0_2, %c0_3] : memref<2x8x8xi8, #tpu.memory_space<vmem>>, vector<2x8x8xi8>
    %2 = arith.sitofp %1 : vector<2x8x8xi8> to vector<2x8x8xf32>
    %cst = arith.constant -1.000000e+30 : f32
    %3 = vector.broadcast %cst : f32 to vector<2x8x8xf32>
    %4 = arith.mulf %2, %3 : vector<2x8x8xf32>
    %c0_4 = arith.constant 0 : index
    %c0_5 = arith.constant 0 : index
    %5 = vector.load %arg2[%c0_4, %c0_5] : memref<16x32xbf16, #tpu.memory_space<vmem>>, vector<16x32xbf16>
    %c0_6 = arith.constant 0 : index
    %c0_7 = arith.constant 0 : index
    %6 = vector.load %arg5[%c0_6, %c0_7] : memref<32x128xbf16, #tpu.memory_space<vmem>>, vector<32x128xbf16>
    %cst_8 = arith.constant dense<0.000000e+00> : vector<16x128xf32>
    %7 = tpu.matmul %5, %6, %cst_8 {dimension_numbers = #tpu.dot_dimension_numbers<[1], [0], [0], [1], [0, 0, 1, 1], [], []>} : vector<16x32xbf16>, vector<32x128xbf16>, vector<16x128xf32> -> vector<16x128xf32>
    %8 = vector.extract_strided_slice %7 {offsets = [0, 0], sizes = [8, 128], strides = [1, 1]} : vector<16x128xf32> to vector<8x128xf32>
    %9 = vector.shape_cast %8 : vector<8x128xf32> to vector<1x8x128xf32>
    %10 = vector.extract_strided_slice %7 {offsets = [8, 0], sizes = [8, 128], strides = [1, 1]} : vector<16x128xf32> to vector<8x128xf32>
    %11 = vector.shape_cast %10 : vector<8x128xf32> to vector<1x8x128xf32>
    %12 = tpu.concatenate %9, %11 in 0 : vector<1x8x128xf32>, vector<1x8x128xf32> -> vector<2x8x128xf32>
    %13 = arith.truncf %12 : vector<2x8x128xf32> to vector<2x8x128xbf16>
    %14 = arith.truncf %0 : vector<16x32xf32> to vector<16x32xbf16>
    %c0_9 = arith.constant 0 : index
    %c0_10 = arith.constant 0 : index
    %c0_11 = arith.constant 0 : index
    %15 = vector.load %arg4[%c0_9, %c0_10, %c0_11] : memref<2x32x32xbf16, #tpu.memory_space<vmem>>, vector<1x32x32xbf16>
    %16 = vector.shape_cast %15 : vector<1x32x32xbf16> to vector<32x32xbf16>
    %cst_12 = arith.constant dense<0.000000e+00> : vector<16x32xf32>
    %17 = tpu.matmul %14, %16, %cst_12 {dimension_numbers = #tpu.dot_dimension_numbers<[1], [0], [0], [1], [0, 0, 1, 1], [], []>} : vector<16x32xbf16>, vector<32x32xbf16>, vector<16x32xf32> -> vector<16x32xf32>
    %18 = vector.extract_strided_slice %17 {offsets = [0, 0], sizes = [8, 32], strides = [1, 1]} : vector<16x32xf32> to vector<8x32xf32>
    %19 = vector.shape_cast %18 : vector<8x32xf32> to vector<1x8x32xf32>
    %20 = vector.extract_strided_slice %17 {offsets = [8, 0], sizes = [8, 32], strides = [1, 1]} : vector<16x32xf32> to vector<8x32xf32>
    %21 = vector.shape_cast %20 : vector<8x32xf32> to vector<1x8x32xf32>
    %22 = tpu.concatenate %19, %21 in 0 : vector<1x8x32xf32>, vector<1x8x32xf32> -> vector<2x8x32xf32>
    %23 = arith.truncf %22 : vector<2x8x32xf32> to vector<2x8x32xbf16>
    %24 = vector.extract_strided_slice %23 {offsets = [0, 0, 0], sizes = [2, 8, 8], strides = [1, 1, 1]} : vector<2x8x32xbf16> to vector<2x8x8xbf16>
    %25 = vector.extract_strided_slice %13 {offsets = [0, 0, 0], sizes = [2, 8, 8], strides = [1, 1, 1]} : vector<2x8x128xbf16> to vector<2x8x8xbf16>
    %26 = vector.extract_strided_slice %13 {offsets = [0, 0, 32], sizes = [2, 8, 8], strides = [1, 1, 1]} : vector<2x8x128xbf16> to vector<2x8x8xbf16>
    "tpu.trace_start"() <{level = 10 : i32, message = "bqd,bkd->bqk"}> : () -> ()
    %cst_13 = arith.constant dense<0.000000e+00> : vector<2x8x8xf32>
    %27 = tpu.matmul %24, %25, %cst_13 {dimension_numbers = #tpu.dot_dimension_numbers<[2], [2], [1], [1], [0, 0, 0, 1, 1, 1], [0], [0]>} : vector<2x8x8xbf16>, vector<2x8x8xbf16>, vector<2x8x8xf32> -> vector<2x8x8xf32>
    "tpu.trace_stop"() : () -> ()
    %28 = arith.addf %27, %4 : vector<2x8x8xf32>
    %cst_14 = arith.constant dense<0xFF800000> : vector<2x8xf32>
    %29 = vector.multi_reduction <maximumf>, %28, %cst_14 [2] : vector<2x8x8xf32> to vector<2x8xf32>
    %30 = vector.shape_cast %29 : vector<2x8xf32> to vector<2x8x1xf32>
    %31 = vector.broadcast %30 : vector<2x8x1xf32> to vector<2x8x8xf32>
    %32 = arith.subf %28, %31 : vector<2x8x8xf32>
    %33 = math.exp %32 : vector<2x8x8xf32>
    %cst_15 = arith.constant dense<0.000000e+00> : vector<2x8xf32>
    %34 = vector.multi_reduction <add>, %33, %cst_15 [2] : vector<2x8x8xf32> to vector<2x8xf32>
    %35 = vector.shape_cast %34 : vector<2x8xf32> to vector<2x8x1xf32>
    %36 = tpu.reciprocal %35 {approx = true} : vector<2x8x1xf32> -> vector<2x8x1xf32>
    %37 = vector.broadcast %36 : vector<2x8x1xf32> to vector<2x8x8xf32>
    %38 = arith.mulf %33, %37 : vector<2x8x8xf32>
    %39 = arith.truncf %38 : vector<2x8x8xf32> to vector<2x8x8xbf16>
    "tpu.trace_start"() <{level = 10 : i32, message = "bqk,bkd->bqd"}> : () -> ()
    %cst_16 = arith.constant dense<0.000000e+00> : vector<2x8x8xf32>
    %40 = tpu.matmul %39, %26, %cst_16 {dimension_numbers = #tpu.dot_dimension_numbers<[2], [1], [1], [2], [0, 0, 0, 1, 1, 2], [0], [0]>} : vector<2x8x8xbf16>, vector<2x8x8xbf16>, vector<2x8x8xf32> -> vector<2x8x8xf32>
    "tpu.trace_stop"() : () -> ()
    %41 = vector.extract_strided_slice %23 {offsets = [0, 0, 8], sizes = [2, 8, 8], strides = [1, 1, 1]} : vector<2x8x32xbf16> to vector<2x8x8xbf16>
    %42 = vector.extract_strided_slice %13 {offsets = [0, 0, 8], sizes = [2, 8, 8], strides = [1, 1, 1]} : vector<2x8x128xbf16> to vector<2x8x8xbf16>
    %43 = vector.extract_strided_slice %13 {offsets = [0, 0, 40], sizes = [2, 8, 8], strides = [1, 1, 1]} : vector<2x8x128xbf16> to vector<2x8x8xbf16>
    "tpu.trace_start"() <{level = 10 : i32, message = "bqd,bkd->bqk"}> : () -> ()
    %cst_17 = arith.constant dense<0.000000e+00> : vector<2x8x8xf32>
    %44 = tpu.matmul %41, %42, %cst_17 {dimension_numbers = #tpu.dot_dimension_numbers<[2], [2], [1], [1], [0, 0, 0, 1, 1, 1], [0], [0]>} : vector<2x8x8xbf16>, vector<2x8x8xbf16>, vector<2x8x8xf32> -> vector<2x8x8xf32>
    "tpu.trace_stop"() : () -> ()
    %45 = arith.addf %44, %4 : vector<2x8x8xf32>
    %cst_18 = arith.constant dense<0xFF800000> : vector<2x8xf32>
    %46 = vector.multi_reduction <maximumf>, %45, %cst_18 [2] : vector<2x8x8xf32> to vector<2x8xf32>
    %47 = vector.shape_cast %46 : vector<2x8xf32> to vector<2x8x1xf32>
    %48 = vector.broadcast %47 : vector<2x8x1xf32> to vector<2x8x8xf32>
    %49 = arith.subf %45, %48 : vector<2x8x8xf32>
    %50 = math.exp %49 : vector<2x8x8xf32>
    %cst_19 = arith.constant dense<0.000000e+00> : vector<2x8xf32>
    %51 = vector.multi_reduction <add>, %50, %cst_19 [2] : vector<2x8x8xf32> to vector<2x8xf32>
    %52 = vector.shape_cast %51 : vector<2x8xf32> to vector<2x8x1xf32>
    %53 = tpu.reciprocal %52 {approx = true} : vector<2x8x1xf32> -> vector<2x8x1xf32>
    %54 = vector.broadcast %53 : vector<2x8x1xf32> to vector<2x8x8xf32>
    %55 = arith.mulf %50, %54 : vector<2x8x8xf32>
    %56 = arith.truncf %55 : vector<2x8x8xf32> to vector<2x8x8xbf16>
    "tpu.trace_start"() <{level = 10 : i32, message = "bqk,bkd->bqd"}> : () -> ()
    %cst_20 = arith.constant dense<0.000000e+00> : vector<2x8x8xf32>
    %57 = tpu.matmul %56, %43, %cst_20 {dimension_numbers = #tpu.dot_dimension_numbers<[2], [1], [1], [2], [0, 0, 0, 1, 1, 2], [0], [0]>} : vector<2x8x8xbf16>, vector<2x8x8xbf16>, vector<2x8x8xf32> -> vector<2x8x8xf32>
    "tpu.trace_stop"() : () -> ()
    %58 = vector.extract_strided_slice %23 {offsets = [0, 0, 16], sizes = [2, 8, 8], strides = [1, 1, 1]} : vector<2x8x32xbf16> to vector<2x8x8xbf16>
    %59 = vector.extract_strided_slice %13 {offsets = [0, 0, 16], sizes = [2, 8, 8], strides = [1, 1, 1]} : vector<2x8x128xbf16> to vector<2x8x8xbf16>
    %60 = vector.extract_strided_slice %13 {offsets = [0, 0, 48], sizes = [2, 8, 8], strides = [1, 1, 1]} : vector<2x8x128xbf16> to vector<2x8x8xbf16>
    "tpu.trace_start"() <{level = 10 : i32, message = "bqd,bkd->bqk"}> : () -> ()
    %cst_21 = arith.constant dense<0.000000e+00> : vector<2x8x8xf32>
    %61 = tpu.matmul %58, %59, %cst_21 {dimension_numbers = #tpu.dot_dimension_numbers<[2], [2], [1], [1], [0, 0, 0, 1, 1, 1], [0], [0]>} : vector<2x8x8xbf16>, vector<2x8x8xbf16>, vector<2x8x8xf32> -> vector<2x8x8xf32>
    "tpu.trace_stop"() : () -> ()
    %62 = arith.addf %61, %4 : vector<2x8x8xf32>
    %cst_22 = arith.constant dense<0xFF800000> : vector<2x8xf32>
    %63 = vector.multi_reduction <maximumf>, %62, %cst_22 [2] : vector<2x8x8xf32> to vector<2x8xf32>
    %64 = vector.shape_cast %63 : vector<2x8xf32> to vector<2x8x1xf32>
    %65 = vector.broadcast %64 : vector<2x8x1xf32> to vector<2x8x8xf32>
    %66 = arith.subf %62, %65 : vector<2x8x8xf32>
    %67 = math.exp %66 : vector<2x8x8xf32>
    %cst_23 = arith.constant dense<0.000000e+00> : vector<2x8xf32>
    %68 = vector.multi_reduction <add>, %67, %cst_23 [2] : vector<2x8x8xf32> to vector<2x8xf32>
    %69 = vector.shape_cast %68 : vector<2x8xf32> to vector<2x8x1xf32>
    %70 = tpu.reciprocal %69 {approx = true} : vector<2x8x1xf32> -> vector<2x8x1xf32>
    %71 = vector.broadcast %70 : vector<2x8x1xf32> to vector<2x8x8xf32>
    %72 = arith.mulf %67, %71 : vector<2x8x8xf32>
    %73 = arith.truncf %72 : vector<2x8x8xf32> to vector<2x8x8xbf16>
    "tpu.trace_start"() <{level = 10 : i32, message = "bqk,bkd->bqd"}> : () -> ()
    %cst_24 = arith.constant dense<0.000000e+00> : vector<2x8x8xf32>
    %74 = tpu.matmul %73, %60, %cst_24 {dimension_numbers = #tpu.dot_dimension_numbers<[2], [1], [1], [2], [0, 0, 0, 1, 1, 2], [0], [0]>} : vector<2x8x8xbf16>, vector<2x8x8xbf16>, vector<2x8x8xf32> -> vector<2x8x8xf32>
    "tpu.trace_stop"() : () -> ()
    %75 = vector.extract_strided_slice %23 {offsets = [0, 0, 24], sizes = [2, 8, 8], strides = [1, 1, 1]} : vector<2x8x32xbf16> to vector<2x8x8xbf16>
    %76 = vector.extract_strided_slice %13 {offsets = [0, 0, 24], sizes = [2, 8, 8], strides = [1, 1, 1]} : vector<2x8x128xbf16> to vector<2x8x8xbf16>
    %77 = vector.extract_strided_slice %13 {offsets = [0, 0, 56], sizes = [2, 8, 8], strides = [1, 1, 1]} : vector<2x8x128xbf16> to vector<2x8x8xbf16>
    "tpu.trace_start"() <{level = 10 : i32, message = "bqd,bkd->bqk"}> : () -> ()
    %cst_25 = arith.constant dense<0.000000e+00> : vector<2x8x8xf32>
    %78 = tpu.matmul %75, %76, %cst_25 {dimension_numbers = #tpu.dot_dimension_numbers<[2], [2], [1], [1], [0, 0, 0, 1, 1, 1], [0], [0]>} : vector<2x8x8xbf16>, vector<2x8x8xbf16>, vector<2x8x8xf32> -> vector<2x8x8xf32>
    "tpu.trace_stop"() : () -> ()
    %79 = arith.addf %78, %4 : vector<2x8x8xf32>
    %cst_26 = arith.constant dense<0xFF800000> : vector<2x8xf32>
    %80 = vector.multi_reduction <maximumf>, %79, %cst_26 [2] : vector<2x8x8xf32> to vector<2x8xf32>
    %81 = vector.shape_cast %80 : vector<2x8xf32> to vector<2x8x1xf32>
    %82 = vector.broadcast %81 : vector<2x8x1xf32> to vector<2x8x8xf32>
    %83 = arith.subf %79, %82 : vector<2x8x8xf32>
    %84 = math.exp %83 : vector<2x8x8xf32>
    %cst_27 = arith.constant dense<0.000000e+00> : vector<2x8xf32>
    %85 = vector.multi_reduction <add>, %84, %cst_27 [2] : vector<2x8x8xf32> to vector<2x8xf32>
    %86 = vector.shape_cast %85 : vector<2x8xf32> to vector<2x8x1xf32>
    %87 = tpu.reciprocal %86 {approx = true} : vector<2x8x1xf32> -> vector<2x8x1xf32>
    %88 = vector.broadcast %87 : vector<2x8x1xf32> to vector<2x8x8xf32>
    %89 = arith.mulf %84, %88 : vector<2x8x8xf32>
    %90 = arith.truncf %89 : vector<2x8x8xf32> to vector<2x8x8xbf16>
    "tpu.trace_start"() <{level = 10 : i32, message = "bqk,bkd->bqd"}> : () -> ()
    %cst_28 = arith.constant dense<0.000000e+00> : vector<2x8x8xf32>
    %91 = tpu.matmul %90, %77, %cst_28 {dimension_numbers = #tpu.dot_dimension_numbers<[2], [1], [1], [2], [0, 0, 0, 1, 1, 2], [0], [0]>} : vector<2x8x8xbf16>, vector<2x8x8xbf16>, vector<2x8x8xf32> -> vector<2x8x8xf32>
    "tpu.trace_stop"() : () -> ()
    %92 = tpu.concatenate %40, %57, %74, %91 in 2 : vector<2x8x8xf32>, vector<2x8x8xf32>, vector<2x8x8xf32>, vector<2x8x8xf32> -> vector<2x8x32xf32>
    %93 = vector.extract_strided_slice %92 {offsets = [0, 0, 0], sizes = [1, 8, 32], strides = [1, 1, 1]} : vector<2x8x32xf32> to vector<1x8x32xf32>
    %94 = vector.shape_cast %93 : vector<1x8x32xf32> to vector<8x32xf32>
    %95 = vector.extract_strided_slice %92 {offsets = [1, 0, 0], sizes = [1, 8, 32], strides = [1, 1, 1]} : vector<2x8x32xf32> to vector<1x8x32xf32>
    %96 = vector.shape_cast %95 : vector<1x8x32xf32> to vector<8x32xf32>
    %97 = tpu.concatenate %94, %96 in 0 : vector<8x32xf32>, vector<8x32xf32> -> vector<16x32xf32>
    %98 = arith.truncf %97 : vector<16x32xf32> to vector<16x32xbf16>
    %c0_29 = arith.constant 0 : index
    %c0_30 = arith.constant 0 : index
    %c0_31 = arith.constant 0 : index
    %99 = vector.load %arg6[%c0_29, %c0_30, %c0_31] : memref<2x32x32xbf16, #tpu.memory_space<vmem>>, vector<1x32x32xbf16>
    %100 = vector.shape_cast %99 : vector<1x32x32xbf16> to vector<32x32xbf16>
    %cst_32 = arith.constant dense<0.000000e+00> : vector<16x32xf32>
    %101 = tpu.matmul %98, %100, %cst_32 {dimension_numbers = #tpu.dot_dimension_numbers<[1], [0], [0], [1], [0, 0, 1, 1], [], []>} : vector<16x32xbf16>, vector<32x32xbf16>, vector<16x32xf32> -> vector<16x32xf32>
    %c0_33 = arith.constant 0 : index
    %c0_34 = arith.constant 0 : index
    %c0_35 = arith.constant 0 : index
    %102 = vector.load %arg7[%c0_33, %c0_34, %c0_35] : memref<2x1x32xf32, #tpu.memory_space<vmem>>, vector<1x1x32xf32>
    %103 = vector.shape_cast %102 : vector<1x1x32xf32> to vector<1x32xf32>
    %104 = vector.broadcast %103 : vector<1x32xf32> to vector<16x32xf32>
    %105 = arith.addf %101, %104 : vector<16x32xf32>
    %106 = arith.addf %0, %105 : vector<16x32xf32>
    %c0_36 = arith.constant 0 : index
    %c0_37 = arith.constant 0 : index
    %c0_38 = arith.constant 0 : index
    %107 = vector.load %arg8[%c0_36, %c0_37, %c0_38] : memref<2x1x32xf32, #tpu.memory_space<vmem>>, vector<1x1x32xf32>
    %108 = vector.shape_cast %107 : vector<1x1x32xf32> to vector<1x32xf32>
    %c0_39 = arith.constant 0 : index
    %c0_40 = arith.constant 0 : index
    %c0_41 = arith.constant 0 : index
    %109 = vector.load %arg9[%c0_39, %c0_40, %c0_41] : memref<2x1x32xf32, #tpu.memory_space<vmem>>, vector<1x1x32xf32>
    %110 = vector.shape_cast %109 : vector<1x1x32xf32> to vector<1x32xf32>
    %cst_42 = arith.constant dense<0.000000e+00> : vector<16xf32>
    %111 = vector.multi_reduction <add>, %106, %cst_42 [1] : vector<16x32xf32> to vector<16xf32>
    %112 = vector.shape_cast %111 : vector<16xf32> to vector<16x1xf32>
    %cst_43 = arith.constant 3.200000e+01 : f32
    %113 = vector.broadcast %cst_43 : f32 to vector<16x1xf32>
    %114 = arith.divf %112, %113 : vector<16x1xf32>
    %115 = vector.broadcast %114 : vector<16x1xf32> to vector<16x32xf32>
    %116 = arith.subf %106, %115 : vector<16x32xf32>
    %117 = arith.mulf %116, %116 : vector<16x32xf32>
    %cst_44 = arith.constant dense<0.000000e+00> : vector<16xf32>
    %118 = vector.multi_reduction <add>, %117, %cst_44 [1] : vector<16x32xf32> to vector<16xf32>
    %119 = vector.shape_cast %118 : vector<16xf32> to vector<16x1xf32>
    %cst_45 = arith.constant 3.200000e+01 : f32
    %120 = vector.broadcast %cst_45 : f32 to vector<16x1xf32>
    %121 = arith.divf %119, %120 : vector<16x1xf32>
    %122 = vector.broadcast %114 : vector<16x1xf32> to vector<16x32xf32>
    %123 = arith.subf %106, %122 : vector<16x32xf32>
    %cst_46 = arith.constant 9.99999974E-6 : f32
    %124 = vector.broadcast %cst_46 : f32 to vector<16x1xf32>
    %125 = arith.addf %121, %124 : vector<16x1xf32>
    %126 = math.rsqrt %125 : vector<16x1xf32>
    %127 = vector.broadcast %126 : vector<16x1xf32> to vector<16x32xf32>
    %128 = arith.mulf %123, %127 : vector<16x32xf32>
    %129 = vector.broadcast %108 : vector<1x32xf32> to vector<16x32xf32>
    %130 = arith.mulf %128, %129 : vector<16x32xf32>
    %131 = vector.broadcast %110 : vector<1x32xf32> to vector<16x32xf32>
    %132 = arith.addf %130, %131 : vector<16x32xf32>
    %133 = arith.truncf %132 : vector<16x32xf32> to vector<16x32xbf16>
    %c0_47 = arith.constant 0 : index
    %c0_48 = arith.constant 0 : index
    %c0_49 = arith.constant 0 : index
    %134 = vector.load %arg10[%c0_47, %c0_48, %c0_49] : memref<2x32x64xbf16, #tpu.memory_space<vmem>>, vector<1x32x64xbf16>
    %135 = vector.shape_cast %134 : vector<1x32x64xbf16> to vector<32x64xbf16>
    %cst_50 = arith.constant dense<0.000000e+00> : vector<16x64xf32>
    %136 = tpu.matmul %133, %135, %cst_50 {dimension_numbers = #tpu.dot_dimension_numbers<[1], [0], [0], [1], [0, 0, 1, 1], [], []>} : vector<16x32xbf16>, vector<32x64xbf16>, vector<16x64xf32> -> vector<16x64xf32>
    %c0_51 = arith.constant 0 : index
    %c0_52 = arith.constant 0 : index
    %c0_53 = arith.constant 0 : index
    %137 = vector.load %arg11[%c0_51, %c0_52, %c0_53] : memref<2x1x64xf32, #tpu.memory_space<vmem>>, vector<1x1x64xf32>
    %138 = vector.shape_cast %137 : vector<1x1x64xf32> to vector<1x64xf32>
    %139 = vector.broadcast %138 : vector<1x64xf32> to vector<16x64xf32>
    %140 = arith.addf %136, %139 : vector<16x64xf32>
    %cst_54 = arith.constant 0.000000e+00 : f32
    %141 = vector.broadcast %cst_54 : f32 to vector<16x64xf32>
    %142 = arith.maximumf %140, %141 : vector<16x64xf32>
    %143 = arith.truncf %142 : vector<16x64xf32> to vector<16x64xbf16>
    %c0_55 = arith.constant 0 : index
    %c0_56 = arith.constant 0 : index
    %c0_57 = arith.constant 0 : index
    %144 = vector.load %arg12[%c0_55, %c0_56, %c0_57] : memref<2x64x32xbf16, #tpu.memory_space<vmem>>, vector<1x64x32xbf16>
    %145 = vector.shape_cast %144 : vector<1x64x32xbf16> to vector<64x32xbf16>
    %cst_58 = arith.constant dense<0.000000e+00> : vector<16x32xf32>
    %146 = tpu.matmul %143, %145, %cst_58 {dimension_numbers = #tpu.dot_dimension_numbers<[1], [0], [0], [1], [0, 0, 1, 1], [], []>} : vector<16x64xbf16>, vector<64x32xbf16>, vector<16x32xf32> -> vector<16x32xf32>
    %c0_59 = arith.constant 0 : index
    %c0_60 = arith.constant 0 : index
    %c0_61 = arith.constant 0 : index
    %147 = vector.load %arg13[%c0_59, %c0_60, %c0_61] : memref<2x1x32xf32, #tpu.memory_space<vmem>>, vector<1x1x32xf32>
    %148 = vector.shape_cast %147 : vector<1x1x32xf32> to vector<1x32xf32>
    %149 = vector.broadcast %148 : vector<1x32xf32> to vector<16x32xf32>
    %150 = arith.addf %146, %149 : vector<16x32xf32>
    %151 = arith.addf %132, %150 : vector<16x32xf32>
    %c0_62 = arith.constant 0 : index
    %c0_63 = arith.constant 0 : index
    %c0_64 = arith.constant 0 : index
    %152 = vector.load %arg14[%c0_62, %c0_63, %c0_64] : memref<2x1x32xf32, #tpu.memory_space<vmem>>, vector<1x1x32xf32>
    %153 = vector.shape_cast %152 : vector<1x1x32xf32> to vector<1x32xf32>
    %c0_65 = arith.constant 0 : index
    %c0_66 = arith.constant 0 : index
    %c0_67 = arith.constant 0 : index
    %154 = vector.load %arg15[%c0_65, %c0_66, %c0_67] : memref<2x1x32xf32, #tpu.memory_space<vmem>>, vector<1x1x32xf32>
    %155 = vector.shape_cast %154 : vector<1x1x32xf32> to vector<1x32xf32>
    %cst_68 = arith.constant dense<0.000000e+00> : vector<16xf32>
    %156 = vector.multi_reduction <add>, %151, %cst_68 [1] : vector<16x32xf32> to vector<16xf32>
    %157 = vector.shape_cast %156 : vector<16xf32> to vector<16x1xf32>
    %cst_69 = arith.constant 3.200000e+01 : f32
    %158 = vector.broadcast %cst_69 : f32 to vector<16x1xf32>
    %159 = arith.divf %157, %158 : vector<16x1xf32>
    %160 = vector.broadcast %159 : vector<16x1xf32> to vector<16x32xf32>
    %161 = arith.subf %151, %160 : vector<16x32xf32>
    %162 = arith.mulf %161, %161 : vector<16x32xf32>
    %cst_70 = arith.constant dense<0.000000e+00> : vector<16xf32>
    %163 = vector.multi_reduction <add>, %162, %cst_70 [1] : vector<16x32xf32> to vector<16xf32>
    %164 = vector.shape_cast %163 : vector<16xf32> to vector<16x1xf32>
    %cst_71 = arith.constant 3.200000e+01 : f32
    %165 = vector.broadcast %cst_71 : f32 to vector<16x1xf32>
    %166 = arith.divf %164, %165 : vector<16x1xf32>
    %167 = vector.broadcast %159 : vector<16x1xf32> to vector<16x32xf32>
    %168 = arith.subf %151, %167 : vector<16x32xf32>
    %cst_72 = arith.constant 9.99999974E-6 : f32
    %169 = vector.broadcast %cst_72 : f32 to vector<16x1xf32>
    %170 = arith.addf %166, %169 : vector<16x1xf32>
    %171 = math.rsqrt %170 : vector<16x1xf32>
    %172 = vector.broadcast %171 : vector<16x1xf32> to vector<16x32xf32>
    %173 = arith.mulf %168, %172 : vector<16x32xf32>
    %174 = vector.broadcast %153 : vector<1x32xf32> to vector<16x32xf32>
    %175 = arith.mulf %173, %174 : vector<16x32xf32>
    %176 = vector.broadcast %155 : vector<1x32xf32> to vector<16x32xf32>
    %177 = arith.addf %175, %176 : vector<16x32xf32>
    %178 = arith.truncf %177 : vector<16x32xf32> to vector<16x32xbf16>
    %c1 = arith.constant 1 : index
    %c0_73 = arith.constant 0 : index
    %c0_74 = arith.constant 0 : index
    %179 = vector.load %arg4[%c1, %c0_73, %c0_74] : memref<2x32x32xbf16, #tpu.memory_space<vmem>>, vector<1x32x32xbf16>
    %180 = vector.shape_cast %179 : vector<1x32x32xbf16> to vector<32x32xbf16>
    %cst_75 = arith.constant dense<0.000000e+00> : vector<16x32xf32>
    %181 = tpu.matmul %178, %180, %cst_75 {dimension_numbers = #tpu.dot_dimension_numbers<[1], [0], [0], [1], [0, 0, 1, 1], [], []>} : vector<16x32xbf16>, vector<32x32xbf16>, vector<16x32xf32> -> vector<16x32xf32>
    %182 = vector.extract_strided_slice %181 {offsets = [0, 0], sizes = [8, 32], strides = [1, 1]} : vector<16x32xf32> to vector<8x32xf32>
    %183 = vector.shape_cast %182 : vector<8x32xf32> to vector<1x8x32xf32>
    %184 = vector.extract_strided_slice %181 {offsets = [8, 0], sizes = [8, 32], strides = [1, 1]} : vector<16x32xf32> to vector<8x32xf32>
    %185 = vector.shape_cast %184 : vector<8x32xf32> to vector<1x8x32xf32>
    %186 = tpu.concatenate %183, %185 in 0 : vector<1x8x32xf32>, vector<1x8x32xf32> -> vector<2x8x32xf32>
    %187 = arith.truncf %186 : vector<2x8x32xf32> to vector<2x8x32xbf16>
    %188 = vector.extract_strided_slice %187 {offsets = [0, 0, 0], sizes = [2, 8, 8], strides = [1, 1, 1]} : vector<2x8x32xbf16> to vector<2x8x8xbf16>
    %189 = vector.extract_strided_slice %13 {offsets = [0, 0, 64], sizes = [2, 8, 8], strides = [1, 1, 1]} : vector<2x8x128xbf16> to vector<2x8x8xbf16>
    %190 = vector.extract_strided_slice %13 {offsets = [0, 0, 96], sizes = [2, 8, 8], strides = [1, 1, 1]} : vector<2x8x128xbf16> to vector<2x8x8xbf16>
    "tpu.trace_start"() <{level = 10 : i32, message = "bqd,bkd->bqk"}> : () -> ()
    %cst_76 = arith.constant dense<0.000000e+00> : vector<2x8x8xf32>
    %191 = tpu.matmul %188, %189, %cst_76 {dimension_numbers = #tpu.dot_dimension_numbers<[2], [2], [1], [1], [0, 0, 0, 1, 1, 1], [0], [0]>} : vector<2x8x8xbf16>, vector<2x8x8xbf16>, vector<2x8x8xf32> -> vector<2x8x8xf32>
    "tpu.trace_stop"() : () -> ()
    %192 = arith.addf %191, %4 : vector<2x8x8xf32>
    %cst_77 = arith.constant dense<0xFF800000> : vector<2x8xf32>
    %193 = vector.multi_reduction <maximumf>, %192, %cst_77 [2] : vector<2x8x8xf32> to vector<2x8xf32>
    %194 = vector.shape_cast %193 : vector<2x8xf32> to vector<2x8x1xf32>
    %195 = vector.broadcast %194 : vector<2x8x1xf32> to vector<2x8x8xf32>
    %196 = arith.subf %192, %195 : vector<2x8x8xf32>
    %197 = math.exp %196 : vector<2x8x8xf32>
    %cst_78 = arith.constant dense<0.000000e+00> : vector<2x8xf32>
    %198 = vector.multi_reduction <add>, %197, %cst_78 [2] : vector<2x8x8xf32> to vector<2x8xf32>
    %199 = vector.shape_cast %198 : vector<2x8xf32> to vector<2x8x1xf32>
    %200 = tpu.reciprocal %199 {approx = true} : vector<2x8x1xf32> -> vector<2x8x1xf32>
    %201 = vector.broadcast %200 : vector<2x8x1xf32> to vector<2x8x8xf32>
    %202 = arith.mulf %197, %201 : vector<2x8x8xf32>
    %203 = arith.truncf %202 : vector<2x8x8xf32> to vector<2x8x8xbf16>
    "tpu.trace_start"() <{level = 10 : i32, message = "bqk,bkd->bqd"}> : () -> ()
    %cst_79 = arith.constant dense<0.000000e+00> : vector<2x8x8xf32>
    %204 = tpu.matmul %203, %190, %cst_79 {dimension_numbers = #tpu.dot_dimension_numbers<[2], [1], [1], [2], [0, 0, 0, 1, 1, 2], [0], [0]>} : vector<2x8x8xbf16>, vector<2x8x8xbf16>, vector<2x8x8xf32> -> vector<2x8x8xf32>
    "tpu.trace_stop"() : () -> ()
    %205 = vector.extract_strided_slice %187 {offsets = [0, 0, 8], sizes = [2, 8, 8], strides = [1, 1, 1]} : vector<2x8x32xbf16> to vector<2x8x8xbf16>
    %206 = vector.extract_strided_slice %13 {offsets = [0, 0, 72], sizes = [2, 8, 8], strides = [1, 1, 1]} : vector<2x8x128xbf16> to vector<2x8x8xbf16>
    %207 = vector.extract_strided_slice %13 {offsets = [0, 0, 104], sizes = [2, 8, 8], strides = [1, 1, 1]} : vector<2x8x128xbf16> to vector<2x8x8xbf16>
    "tpu.trace_start"() <{level = 10 : i32, message = "bqd,bkd->bqk"}> : () -> ()
    %cst_80 = arith.constant dense<0.000000e+00> : vector<2x8x8xf32>
    %208 = tpu.matmul %205, %206, %cst_80 {dimension_numbers = #tpu.dot_dimension_numbers<[2], [2], [1], [1], [0, 0, 0, 1, 1, 1], [0], [0]>} : vector<2x8x8xbf16>, vector<2x8x8xbf16>, vector<2x8x8xf32> -> vector<2x8x8xf32>
    "tpu.trace_stop"() : () -> ()
    %209 = arith.addf %208, %4 : vector<2x8x8xf32>
    %cst_81 = arith.constant dense<0xFF800000> : vector<2x8xf32>
    %210 = vector.multi_reduction <maximumf>, %209, %cst_81 [2] : vector<2x8x8xf32> to vector<2x8xf32>
    %211 = vector.shape_cast %210 : vector<2x8xf32> to vector<2x8x1xf32>
    %212 = vector.broadcast %211 : vector<2x8x1xf32> to vector<2x8x8xf32>
    %213 = arith.subf %209, %212 : vector<2x8x8xf32>
    %214 = math.exp %213 : vector<2x8x8xf32>
    %cst_82 = arith.constant dense<0.000000e+00> : vector<2x8xf32>
    %215 = vector.multi_reduction <add>, %214, %cst_82 [2] : vector<2x8x8xf32> to vector<2x8xf32>
    %216 = vector.shape_cast %215 : vector<2x8xf32> to vector<2x8x1xf32>
    %217 = tpu.reciprocal %216 {approx = true} : vector<2x8x1xf32> -> vector<2x8x1xf32>
    %218 = vector.broadcast %217 : vector<2x8x1xf32> to vector<2x8x8xf32>
    %219 = arith.mulf %214, %218 : vector<2x8x8xf32>
    %220 = arith.truncf %219 : vector<2x8x8xf32> to vector<2x8x8xbf16>
    "tpu.trace_start"() <{level = 10 : i32, message = "bqk,bkd->bqd"}> : () -> ()
    %cst_83 = arith.constant dense<0.000000e+00> : vector<2x8x8xf32>
    %221 = tpu.matmul %220, %207, %cst_83 {dimension_numbers = #tpu.dot_dimension_numbers<[2], [1], [1], [2], [0, 0, 0, 1, 1, 2], [0], [0]>} : vector<2x8x8xbf16>, vector<2x8x8xbf16>, vector<2x8x8xf32> -> vector<2x8x8xf32>
    "tpu.trace_stop"() : () -> ()
    %222 = vector.extract_strided_slice %187 {offsets = [0, 0, 16], sizes = [2, 8, 8], strides = [1, 1, 1]} : vector<2x8x32xbf16> to vector<2x8x8xbf16>
    %223 = vector.extract_strided_slice %13 {offsets = [0, 0, 80], sizes = [2, 8, 8], strides = [1, 1, 1]} : vector<2x8x128xbf16> to vector<2x8x8xbf16>
    %224 = vector.extract_strided_slice %13 {offsets = [0, 0, 112], sizes = [2, 8, 8], strides = [1, 1, 1]} : vector<2x8x128xbf16> to vector<2x8x8xbf16>
    "tpu.trace_start"() <{level = 10 : i32, message = "bqd,bkd->bqk"}> : () -> ()
    %cst_84 = arith.constant dense<0.000000e+00> : vector<2x8x8xf32>
    %225 = tpu.matmul %222, %223, %cst_84 {dimension_numbers = #tpu.dot_dimension_numbers<[2], [2], [1], [1], [0, 0, 0, 1, 1, 1], [0], [0]>} : vector<2x8x8xbf16>, vector<2x8x8xbf16>, vector<2x8x8xf32> -> vector<2x8x8xf32>
    "tpu.trace_stop"() : () -> ()
    %226 = arith.addf %225, %4 : vector<2x8x8xf32>
    %cst_85 = arith.constant dense<0xFF800000> : vector<2x8xf32>
    %227 = vector.multi_reduction <maximumf>, %226, %cst_85 [2] : vector<2x8x8xf32> to vector<2x8xf32>
    %228 = vector.shape_cast %227 : vector<2x8xf32> to vector<2x8x1xf32>
    %229 = vector.broadcast %228 : vector<2x8x1xf32> to vector<2x8x8xf32>
    %230 = arith.subf %226, %229 : vector<2x8x8xf32>
    %231 = math.exp %230 : vector<2x8x8xf32>
    %cst_86 = arith.constant dense<0.000000e+00> : vector<2x8xf32>
    %232 = vector.multi_reduction <add>, %231, %cst_86 [2] : vector<2x8x8xf32> to vector<2x8xf32>
    %233 = vector.shape_cast %232 : vector<2x8xf32> to vector<2x8x1xf32>
    %234 = tpu.reciprocal %233 {approx = true} : vector<2x8x1xf32> -> vector<2x8x1xf32>
    %235 = vector.broadcast %234 : vector<2x8x1xf32> to vector<2x8x8xf32>
    %236 = arith.mulf %231, %235 : vector<2x8x8xf32>
    %237 = arith.truncf %236 : vector<2x8x8xf32> to vector<2x8x8xbf16>
    "tpu.trace_start"() <{level = 10 : i32, message = "bqk,bkd->bqd"}> : () -> ()
    %cst_87 = arith.constant dense<0.000000e+00> : vector<2x8x8xf32>
    %238 = tpu.matmul %237, %224, %cst_87 {dimension_numbers = #tpu.dot_dimension_numbers<[2], [1], [1], [2], [0, 0, 0, 1, 1, 2], [0], [0]>} : vector<2x8x8xbf16>, vector<2x8x8xbf16>, vector<2x8x8xf32> -> vector<2x8x8xf32>
    "tpu.trace_stop"() : () -> ()
    %239 = vector.extract_strided_slice %187 {offsets = [0, 0, 24], sizes = [2, 8, 8], strides = [1, 1, 1]} : vector<2x8x32xbf16> to vector<2x8x8xbf16>
    %240 = vector.extract_strided_slice %13 {offsets = [0, 0, 88], sizes = [2, 8, 8], strides = [1, 1, 1]} : vector<2x8x128xbf16> to vector<2x8x8xbf16>
    %241 = vector.extract_strided_slice %13 {offsets = [0, 0, 120], sizes = [2, 8, 8], strides = [1, 1, 1]} : vector<2x8x128xbf16> to vector<2x8x8xbf16>
    "tpu.trace_start"() <{level = 10 : i32, message = "bqd,bkd->bqk"}> : () -> ()
    %cst_88 = arith.constant dense<0.000000e+00> : vector<2x8x8xf32>
    %242 = tpu.matmul %239, %240, %cst_88 {dimension_numbers = #tpu.dot_dimension_numbers<[2], [2], [1], [1], [0, 0, 0, 1, 1, 1], [0], [0]>} : vector<2x8x8xbf16>, vector<2x8x8xbf16>, vector<2x8x8xf32> -> vector<2x8x8xf32>
    "tpu.trace_stop"() : () -> ()
    %243 = arith.addf %242, %4 : vector<2x8x8xf32>
    %cst_89 = arith.constant dense<0xFF800000> : vector<2x8xf32>
    %244 = vector.multi_reduction <maximumf>, %243, %cst_89 [2] : vector<2x8x8xf32> to vector<2x8xf32>
    %245 = vector.shape_cast %244 : vector<2x8xf32> to vector<2x8x1xf32>
    %246 = vector.broadcast %245 : vector<2x8x1xf32> to vector<2x8x8xf32>
    %247 = arith.subf %243, %246 : vector<2x8x8xf32>
    %248 = math.exp %247 : vector<2x8x8xf32>
    %cst_90 = arith.constant dense<0.000000e+00> : vector<2x8xf32>
    %249 = vector.multi_reduction <add>, %248, %cst_90 [2] : vector<2x8x8xf32> to vector<2x8xf32>
    %250 = vector.shape_cast %249 : vector<2x8xf32> to vector<2x8x1xf32>
    %251 = tpu.reciprocal %250 {approx = true} : vector<2x8x1xf32> -> vector<2x8x1xf32>
    %252 = vector.broadcast %251 : vector<2x8x1xf32> to vector<2x8x8xf32>
    %253 = arith.mulf %248, %252 : vector<2x8x8xf32>
    %254 = arith.truncf %253 : vector<2x8x8xf32> to vector<2x8x8xbf16>
    "tpu.trace_start"() <{level = 10 : i32, message = "bqk,bkd->bqd"}> : () -> ()
    %cst_91 = arith.constant dense<0.000000e+00> : vector<2x8x8xf32>
    %255 = tpu.matmul %254, %241, %cst_91 {dimension_numbers = #tpu.dot_dimension_numbers<[2], [1], [1], [2], [0, 0, 0, 1, 1, 2], [0], [0]>} : vector<2x8x8xbf16>, vector<2x8x8xbf16>, vector<2x8x8xf32> -> vector<2x8x8xf32>
    "tpu.trace_stop"() : () -> ()
    %256 = tpu.concatenate %204, %221, %238, %255 in 2 : vector<2x8x8xf32>, vector<2x8x8xf32>, vector<2x8x8xf32>, vector<2x8x8xf32> -> vector<2x8x32xf32>
    %257 = vector.extract_strided_slice %256 {offsets = [0, 0, 0], sizes = [1, 8, 32], strides = [1, 1, 1]} : vector<2x8x32xf32> to vector<1x8x32xf32>
    %258 = vector.shape_cast %257 : vector<1x8x32xf32> to vector<8x32xf32>
    %259 = vector.extract_strided_slice %256 {offsets = [1, 0, 0], sizes = [1, 8, 32], strides = [1, 1, 1]} : vector<2x8x32xf32> to vector<1x8x32xf32>
    %260 = vector.shape_cast %259 : vector<1x8x32xf32> to vector<8x32xf32>
    %261 = tpu.concatenate %258, %260 in 0 : vector<8x32xf32>, vector<8x32xf32> -> vector<16x32xf32>
    %262 = arith.truncf %261 : vector<16x32xf32> to vector<16x32xbf16>
    %c1_92 = arith.constant 1 : index
    %c0_93 = arith.constant 0 : index
    %c0_94 = arith.constant 0 : index
    %263 = vector.load %arg6[%c1_92, %c0_93, %c0_94] : memref<2x32x32xbf16, #tpu.memory_space<vmem>>, vector<1x32x32xbf16>
    %264 = vector.shape_cast %263 : vector<1x32x32xbf16> to vector<32x32xbf16>
    %cst_95 = arith.constant dense<0.000000e+00> : vector<16x32xf32>
    %265 = tpu.matmul %262, %264, %cst_95 {dimension_numbers = #tpu.dot_dimension_numbers<[1], [0], [0], [1], [0, 0, 1, 1], [], []>} : vector<16x32xbf16>, vector<32x32xbf16>, vector<16x32xf32> -> vector<16x32xf32>
    %c1_96 = arith.constant 1 : index
    %c0_97 = arith.constant 0 : index
    %c0_98 = arith.constant 0 : index
    %266 = vector.load %arg7[%c1_96, %c0_97, %c0_98] : memref<2x1x32xf32, #tpu.memory_space<vmem>>, vector<1x1x32xf32>
    %267 = vector.shape_cast %266 : vector<1x1x32xf32> to vector<1x32xf32>
    %268 = vector.broadcast %267 : vector<1x32xf32> to vector<16x32xf32>
    %269 = arith.addf %265, %268 : vector<16x32xf32>
    %270 = arith.addf %177, %269 : vector<16x32xf32>
    %c1_99 = arith.constant 1 : index
    %c0_100 = arith.constant 0 : index
    %c0_101 = arith.constant 0 : index
    %271 = vector.load %arg8[%c1_99, %c0_100, %c0_101] : memref<2x1x32xf32, #tpu.memory_space<vmem>>, vector<1x1x32xf32>
    %272 = vector.shape_cast %271 : vector<1x1x32xf32> to vector<1x32xf32>
    %c1_102 = arith.constant 1 : index
    %c0_103 = arith.constant 0 : index
    %c0_104 = arith.constant 0 : index
    %273 = vector.load %arg9[%c1_102, %c0_103, %c0_104] : memref<2x1x32xf32, #tpu.memory_space<vmem>>, vector<1x1x32xf32>
    %274 = vector.shape_cast %273 : vector<1x1x32xf32> to vector<1x32xf32>
    %cst_105 = arith.constant dense<0.000000e+00> : vector<16xf32>
    %275 = vector.multi_reduction <add>, %270, %cst_105 [1] : vector<16x32xf32> to vector<16xf32>
    %276 = vector.shape_cast %275 : vector<16xf32> to vector<16x1xf32>
    %cst_106 = arith.constant 3.200000e+01 : f32
    %277 = vector.broadcast %cst_106 : f32 to vector<16x1xf32>
    %278 = arith.divf %276, %277 : vector<16x1xf32>
    %279 = vector.broadcast %278 : vector<16x1xf32> to vector<16x32xf32>
    %280 = arith.subf %270, %279 : vector<16x32xf32>
    %281 = arith.mulf %280, %280 : vector<16x32xf32>
    %cst_107 = arith.constant dense<0.000000e+00> : vector<16xf32>
    %282 = vector.multi_reduction <add>, %281, %cst_107 [1] : vector<16x32xf32> to vector<16xf32>
    %283 = vector.shape_cast %282 : vector<16xf32> to vector<16x1xf32>
    %cst_108 = arith.constant 3.200000e+01 : f32
    %284 = vector.broadcast %cst_108 : f32 to vector<16x1xf32>
    %285 = arith.divf %283, %284 : vector<16x1xf32>
    %286 = vector.broadcast %278 : vector<16x1xf32> to vector<16x32xf32>
    %287 = arith.subf %270, %286 : vector<16x32xf32>
    %cst_109 = arith.constant 9.99999974E-6 : f32
    %288 = vector.broadcast %cst_109 : f32 to vector<16x1xf32>
    %289 = arith.addf %285, %288 : vector<16x1xf32>
    %290 = math.rsqrt %289 : vector<16x1xf32>
    %291 = vector.broadcast %290 : vector<16x1xf32> to vector<16x32xf32>
    %292 = arith.mulf %287, %291 : vector<16x32xf32>
    %293 = vector.broadcast %272 : vector<1x32xf32> to vector<16x32xf32>
    %294 = arith.mulf %292, %293 : vector<16x32xf32>
    %295 = vector.broadcast %274 : vector<1x32xf32> to vector<16x32xf32>
    %296 = arith.addf %294, %295 : vector<16x32xf32>
    %297 = arith.truncf %296 : vector<16x32xf32> to vector<16x32xbf16>
    %c1_110 = arith.constant 1 : index
    %c0_111 = arith.constant 0 : index
    %c0_112 = arith.constant 0 : index
    %298 = vector.load %arg10[%c1_110, %c0_111, %c0_112] : memref<2x32x64xbf16, #tpu.memory_space<vmem>>, vector<1x32x64xbf16>
    %299 = vector.shape_cast %298 : vector<1x32x64xbf16> to vector<32x64xbf16>
    %cst_113 = arith.constant dense<0.000000e+00> : vector<16x64xf32>
    %300 = tpu.matmul %297, %299, %cst_113 {dimension_numbers = #tpu.dot_dimension_numbers<[1], [0], [0], [1], [0, 0, 1, 1], [], []>} : vector<16x32xbf16>, vector<32x64xbf16>, vector<16x64xf32> -> vector<16x64xf32>
    %c1_114 = arith.constant 1 : index
    %c0_115 = arith.constant 0 : index
    %c0_116 = arith.constant 0 : index
    %301 = vector.load %arg11[%c1_114, %c0_115, %c0_116] : memref<2x1x64xf32, #tpu.memory_space<vmem>>, vector<1x1x64xf32>
    %302 = vector.shape_cast %301 : vector<1x1x64xf32> to vector<1x64xf32>
    %303 = vector.broadcast %302 : vector<1x64xf32> to vector<16x64xf32>
    %304 = arith.addf %300, %303 : vector<16x64xf32>
    %cst_117 = arith.constant 0.000000e+00 : f32
    %305 = vector.broadcast %cst_117 : f32 to vector<16x64xf32>
    %306 = arith.maximumf %304, %305 : vector<16x64xf32>
    %307 = arith.truncf %306 : vector<16x64xf32> to vector<16x64xbf16>
    %c1_118 = arith.constant 1 : index
    %c0_119 = arith.constant 0 : index
    %c0_120 = arith.constant 0 : index
    %308 = vector.load %arg12[%c1_118, %c0_119, %c0_120] : memref<2x64x32xbf16, #tpu.memory_space<vmem>>, vector<1x64x32xbf16>
    %309 = vector.shape_cast %308 : vector<1x64x32xbf16> to vector<64x32xbf16>
    %cst_121 = arith.constant dense<0.000000e+00> : vector<16x32xf32>
    %310 = tpu.matmul %307, %309, %cst_121 {dimension_numbers = #tpu.dot_dimension_numbers<[1], [0], [0], [1], [0, 0, 1, 1], [], []>} : vector<16x64xbf16>, vector<64x32xbf16>, vector<16x32xf32> -> vector<16x32xf32>
    %c1_122 = arith.constant 1 : index
    %c0_123 = arith.constant 0 : index
    %c0_124 = arith.constant 0 : index
    %311 = vector.load %arg13[%c1_122, %c0_123, %c0_124] : memref<2x1x32xf32, #tpu.memory_space<vmem>>, vector<1x1x32xf32>
    %312 = vector.shape_cast %311 : vector<1x1x32xf32> to vector<1x32xf32>
    %313 = vector.broadcast %312 : vector<1x32xf32> to vector<16x32xf32>
    %314 = arith.addf %310, %313 : vector<16x32xf32>
    %315 = arith.addf %296, %314 : vector<16x32xf32>
    %c1_125 = arith.constant 1 : index
    %c0_126 = arith.constant 0 : index
    %c0_127 = arith.constant 0 : index
    %316 = vector.load %arg14[%c1_125, %c0_126, %c0_127] : memref<2x1x32xf32, #tpu.memory_space<vmem>>, vector<1x1x32xf32>
    %317 = vector.shape_cast %316 : vector<1x1x32xf32> to vector<1x32xf32>
    %c1_128 = arith.constant 1 : index
    %c0_129 = arith.constant 0 : index
    %c0_130 = arith.constant 0 : index
    %318 = vector.load %arg15[%c1_128, %c0_129, %c0_130] : memref<2x1x32xf32, #tpu.memory_space<vmem>>, vector<1x1x32xf32>
    %319 = vector.shape_cast %318 : vector<1x1x32xf32> to vector<1x32xf32>
    %cst_131 = arith.constant dense<0.000000e+00> : vector<16xf32>
    %320 = vector.multi_reduction <add>, %315, %cst_131 [1] : vector<16x32xf32> to vector<16xf32>
    %321 = vector.shape_cast %320 : vector<16xf32> to vector<16x1xf32>
    %cst_132 = arith.constant 3.200000e+01 : f32
    %322 = vector.broadcast %cst_132 : f32 to vector<16x1xf32>
    %323 = arith.divf %321, %322 : vector<16x1xf32>
    %324 = vector.broadcast %323 : vector<16x1xf32> to vector<16x32xf32>
    %325 = arith.subf %315, %324 : vector<16x32xf32>
    %326 = arith.mulf %325, %325 : vector<16x32xf32>
    %cst_133 = arith.constant dense<0.000000e+00> : vector<16xf32>
    %327 = vector.multi_reduction <add>, %326, %cst_133 [1] : vector<16x32xf32> to vector<16xf32>
    %328 = vector.shape_cast %327 : vector<16xf32> to vector<16x1xf32>
    %cst_134 = arith.constant 3.200000e+01 : f32
    %329 = vector.broadcast %cst_134 : f32 to vector<16x1xf32>
    %330 = arith.divf %328, %329 : vector<16x1xf32>
    %331 = vector.broadcast %323 : vector<16x1xf32> to vector<16x32xf32>
    %332 = arith.subf %315, %331 : vector<16x32xf32>
    %cst_135 = arith.constant 9.99999974E-6 : f32
    %333 = vector.broadcast %cst_135 : f32 to vector<16x1xf32>
    %334 = arith.addf %330, %333 : vector<16x1xf32>
    %335 = math.rsqrt %334 : vector<16x1xf32>
    %336 = vector.broadcast %335 : vector<16x1xf32> to vector<16x32xf32>
    %337 = arith.mulf %332, %336 : vector<16x32xf32>
    %338 = vector.broadcast %317 : vector<1x32xf32> to vector<16x32xf32>
    %339 = arith.mulf %337, %338 : vector<16x32xf32>
    %340 = vector.broadcast %319 : vector<1x32xf32> to vector<16x32xf32>
    %341 = arith.addf %339, %340 : vector<16x32xf32>
    %c0_136 = arith.constant 0 : index
    %c0_137 = arith.constant 0 : index
    %342 = vector.load %arg16[%c0_136, %c0_137] : memref<16x32xf32, #tpu.memory_space<vmem>>, vector<16x32xf32>
    tpu.vector_store %arg16[%c0_136, %c0_137], %341 {strides = array<i32>} : memref<16x32xf32, #tpu.memory_space<vmem>>, vector<16x32xf32>,
    return
  }
  func.func @transform_0(%arg0: i32) -> (i32, i32) {
    %c0_i32 = arith.constant 0 : i32
    %c0_i32_0 = arith.constant 0 : i32
    %c0_i32_1 = arith.constant 0 : i32
    return %c0_i32, %c0_i32_0 : i32, i32
  }
  func.func @transform_1(%arg0: i32) -> (i32, i32) {
    %c0_i32 = arith.constant 0 : i32
    %c0_i32_0 = arith.constant 0 : i32
    %c0_i32_1 = arith.constant 0 : i32
    return %c0_i32, %c0_i32_0 : i32, i32
  }
  func.func @transform_2(%arg0: i32) -> (i32, i32, i32) {
    %c0_i32 = arith.constant 0 : i32
    %c0_i32_0 = arith.constant 0 : i32
    %c0_i32_1 = arith.constant 0 : i32
    %c0_i32_2 = arith.constant 0 : i32
    return %c0_i32, %c0_i32_0, %c0_i32_1 : i32, i32, i32
  }
  func.func @transform_3(%arg0: i32) -> (i32, i32, i32) {
    %c0_i32 = arith.constant 0 : i32
    %c0_i32_0 = arith.constant 0 : i32
    %c0_i32_1 = arith.constant 0 : i32
    %c0_i32_2 = arith.constant 0 : i32
    return %c0_i32, %c0_i32_0, %c0_i32_1 : i32, i32, i32
  }
  func.func @transform_4(%arg0: i32) -> (i32, i32) {
    %c0_i32 = arith.constant 0 : i32
    %c0_i32_0 = arith.constant 0 : i32
    %c0_i32_1 = arith.constant 0 : i32
    return %c0_i32, %c0_i32_0 : i32, i32
  }
  func.func @transform_5(%arg0: i32) -> (i32, i32, i32) {
    %c0_i32 = arith.constant 0 : i32
    %c0_i32_0 = arith.constant 0 : i32
    %c0_i32_1 = arith.constant 0 : i32
    %c0_i32_2 = arith.constant 0 : i32
    return %c0_i32, %c0_i32_0, %c0_i32_1 : i32, i32, i32
  }
  func.func @transform_6(%arg0: i32) -> (i32, i32, i32) {
    %c0_i32 = arith.constant 0 : i32
    %c0_i32_0 = arith.constant 0 : i32
    %c0_i32_1 = arith.constant 0 : i32
    %c0_i32_2 = arith.constant 0 : i32
    return %c0_i32, %c0_i32_0, %c0_i32_1 : i32, i32, i32
  }
  func.func @transform_7(%arg0: i32) -> (i32, i32, i32) {
    %c0_i32 = arith.constant 0 : i32
    %c0_i32_0 = arith.constant 0 : i32
    %c0_i32_1 = arith.constant 0 : i32
    %c0_i32_2 = arith.constant 0 : i32
    return %c0_i32, %c0_i32_0, %c0_i32_1 : i32, i32, i32
  }
  func.func @transform_8(%arg0: i32) -> (i32, i32, i32) {
    %c0_i32 = arith.constant 0 : i32
    %c0_i32_0 = arith.constant 0 : i32
    %c0_i32_1 = arith.constant 0 : i32
    %c0_i32_2 = arith.constant 0 : i32
    return %c0_i32, %c0_i32_0, %c0_i32_1 : i32, i32, i32
  }
  func.func @transform_9(%arg0: i32) -> (i32, i32, i32) {
    %c0_i32 = arith.constant 0 : i32
    %c0_i32_0 = arith.constant 0 : i32
    %c0_i32_1 = arith.constant 0 : i32
    %c0_i32_2 = arith.constant 0 : i32
    return %c0_i32, %c0_i32_0, %c0_i32_1 : i32, i32, i32
  }
  func.func @transform_10(%arg0: i32) -> (i32, i32, i32) {
    %c0_i32 = arith.constant 0 : i32
    %c0_i32_0 = arith.constant 0 : i32
    %c0_i32_1 = arith.constant 0 : i32
    %c0_i32_2 = arith.constant 0 : i32
    return %c0_i32, %c0_i32_0, %c0_i32_1 : i32, i32, i32
  }
  func.func @transform_11(%arg0: i32) -> (i32, i32, i32) {
    %c0_i32 = arith.constant 0 : i32
    %c0_i32_0 = arith.constant 0 : i32
    %c0_i32_1 = arith.constant 0 : i32
    %c0_i32_2 = arith.constant 0 : i32
    return %c0_i32, %c0_i32_0, %c0_i32_1 : i32, i32, i32
  }
  func.func @transform_12(%arg0: i32) -> (i32, i32, i32) {
    %c0_i32 = arith.constant 0 : i32
    %c0_i32_0 = arith.constant 0 : i32
    %c0_i32_1 = arith.constant 0 : i32
    %c0_i32_2 = arith.constant 0 : i32
    return %c0_i32, %c0_i32_0, %c0_i32_1 : i32, i32, i32
  }
  func.func @transform_13(%arg0: i32) -> (i32, i32, i32) {
    %c0_i32 = arith.constant 0 : i32
    %c0_i32_0 = arith.constant 0 : i32
    %c0_i32_1 = arith.constant 0 : i32
    %c0_i32_2 = arith.constant 0 : i32
    return %c0_i32, %c0_i32_0, %c0_i32_1 : i32, i32, i32
  }
  func.func @transform_14(%arg0: i32) -> (i32, i32, i32) {
    %c0_i32 = arith.constant 0 : i32
    %c0_i32_0 = arith.constant 0 : i32
    %c0_i32_1 = arith.constant 0 : i32
    %c0_i32_2 = arith.constant 0 : i32
    return %c0_i32, %c0_i32_0, %c0_i32_1 : i32, i32, i32
  }
  func.func @transform_15(%arg0: i32) -> (i32, i32) {
    %c0_i32 = arith.constant 0 : i32
    %c0_i32_0 = arith.constant 0 : i32
    %c0_i32_1 = arith.constant 0 : i32
    return %c0_i32, %c0_i32_0 : i32, i32
  }
}

</mosaic_0001>

<bundles_post_ra>
// kernel: tpu_custom_call.1
= control target key start
LH: loop header
LB: loop body
LE: loop exit
PB: predicated region body
PF: predicated region fallthrough
CT: control target
= control target key end

     0   :  { %20 = vsyncpa [#allocation3], 0  ;;  %s4299_s0 = inlined_call_operand.hbm [shape: f32[16,32], index: 0, kind: input, shape index: {}]   ;;  %s4300_s1 = inlined_call_operand.hbm [shape: bf16[16,32], index: 1, kind: input, shape index: {}]   ;;  %s4301_s2 = inlined_call_operand.vmem [shape: s8[2,8,8], index: 2, kind: input, shape index: {}]   ;;  %s4302_s3 = inlined_call_operand.vmem [shape: bf16[2,32,32], index: 3, kind: input, shape index: {}]   ;;  %s4303_s4 = inlined_call_operand.hbm [shape: bf16[32,128], index: 4, kind: input, shape index: {}]   ;;  %s4304_s5 = inlined_call_operand.vmem [shape: bf16[2,32,32], index: 5, kind: input, shape index: {}]   ;;  %s4305_s6 = inlined_call_operand.vmem [shape: f32[2,1,32], index: 6, kind: input, shape index: {}]   ;;  %s4306_s7 = inlined_call_operand.vmem [shape: f32[2,1,32], index: 7, kind: input, shape index: {}]   ;;  %s4307_s8 = inlined_call_operand.hbm [shape: f32[2,1,32], index: 8, kind: input, shape index: {}]   ;;  %s4308_s9 = inlined_call_operand.vmem [shape: bf16[2,32,64], index: 9, kind: input, shape index: {}]   ;;  %s4309_s10 = inlined_call_operand.hbm [shape: f32[2,1,64], index: 10, kind: input, shape index: {}]   ;;  %s4310_s11 = inlined_call_operand.vmem [shape: bf16[2,64,32], index: 11, kind: input, shape index: {}]   ;;  %s4311_s12 = inlined_call_operand.vmem [shape: f32[2,1,32], index: 12, kind: input, shape index: {}]   ;;  %s4312_s13 = inlined_call_operand.vmem [shape: f32[2,1,32], index: 13, kind: input, shape index: {}]   ;;  %s4313_s14 = inlined_call_operand.vmem [shape: f32[2,1,32], index: 14, kind: input, shape index: {}]   ;;  %s4314_s15 = inlined_call_operand.hbm [shape: f32[16,32], index: 15, kind: output, shape index: {}]  }
   0x1   :  { %21 = vsyncpa [#allocation6], 0 }
   0x2   :  { %22 = vsyncpa [#allocation9], 0 }
   0x3   :  { %23 = vsyncpa [#allocation4], 0  ;;  %s3579_s18 = smov [#allocation5]   ;;  %s3439_s22 = scalar_lea.hbm %s4300_s1, 128 }
   0x4   :  { %s41_s19 = sshll.u32 %s3579_s18, 4  ;;  %p3440_p0 = scmp.ne.s32.totalorder %s4300_s1, %s3439_s22  ;;  %s42_s19 = int_to_ptr.vmem [resolvable:$true] %s41_s19 }
   0x5   :  { %p3443_p1 = scmp.lt.u32.totalorder %s3439_s22, %s4300_s1 }
   0x7   :  { %p3445_p2 = pnand %p3443_p1, %p3440_p0 }
   0x9   :  { %3448 = shalt.err (!%p3445_p2)
}
   0xa   :  { %s3449_s27 = scalar_lea.vmem %s42_s19, 128  ;;  %p3454_p4 = scmp.lt.s32.totalorder %s42_s19, %s42_s19 }
   0xb   :  { %p3450_p3 = scmp.ne.s32.totalorder %s42_s19, %s3449_s27  ;;  %p3455_p5 = scmp.lt.s32.totalorder %s3449_s27, %s3449_s27 }
   0xd   :  { %p3456_p6 = por %p3455_p5, %p3454_p4 }
   0xf   :  { %p3457_p7 = pnand %p3456_p6, %p3450_p3 }
  0x11   :  { %3460 = shalt.err (!%p3457_p7)
}
  0x12   :  { %s4315_s28 = smov 64   ;;  %s3581_s29 = smov 4  }
  0x13   :  { %47 = dma.hbm_to_vmem [thread:$0]  %s4300_s1, 128, %s42_s19, [#allocation6], %s4315_s28, %s4315_s28, %s3581_s29  }
  0x14   :  { %s3582_s17 = smov [#allocation8]   ;;  %s3461_s22 = scalar_lea.hbm %s4307_s8, 32 }
  0x15   :  { %s75_s18 = sshll.u32 %s3582_s17, 4  ;;  %p3462_p8 = scmp.ne.s32.totalorder %s4307_s8, %s3461_s22  ;;  %s76_s18 = int_to_ptr.vmem [resolvable:$true] %s75_s18 }
  0x16   :  { %p3465_p9 = scmp.lt.u32.totalorder %s3461_s22, %s4307_s8 }
  0x18   :  { %p3467_p10 = pnand %p3465_p9, %p3462_p8 }
  0x1a   :  { %3470 = shalt.err (!%p3467_p10)
}
  0x1b   :  { %s3471_s27 = scalar_lea.vmem %s76_s18, 32  ;;  %p3476_p12 = scmp.lt.s32.totalorder %s76_s18, %s76_s18 }
  0x1c   :  { %p3472_p11 = scmp.ne.s32.totalorder %s76_s18, %s3471_s27  ;;  %p3477_p13 = scmp.lt.s32.totalorder %s3471_s27, %s3471_s27 }
  0x1e   :  { %p3478_p0 = por %p3477_p13, %p3476_p12 }
  0x20   :  { %p3479_p1 = pnand %p3478_p0, %p3472_p11 }
  0x22   :  { %3482 = shalt.err (!%p3479_p1)
}
  0x23   :  { %s4317_s1 = smov 16   ;;  %s4319_s19 = smov 1  }
  0x24   :  { %81 = dma.hbm_to_vmem [thread:$0]  %s4307_s8, 32, %s76_s18, [#allocation9], %s4317_s1, %s4317_s1, %s4319_s19  }
  0x25   :  { %s3585_s17 = smov [#allocation2]   ;;  %s3483_s23 = scalar_lea.hbm %s4299_s0, 256 }
  0x26   :  { %s29_s20 = sshll.u32 %s3585_s17, 4  ;;  %p3484_p2 = scmp.ne.s32.totalorder %s4299_s0, %s3483_s23  ;;  %s30_s20 = int_to_ptr.vmem [resolvable:$true] %s29_s20 }
  0x27   :  { %p3487_p3 = scmp.lt.u32.totalorder %s3483_s23, %s4299_s0 }
  0x29   :  { %p3489_p4 = pnand %p3487_p3, %p3484_p2 }
  0x2b   :  { %3492 = shalt.err (!%p3489_p4)
}
  0x2c   :  { %s3493_s28 = scalar_lea.vmem %s30_s20, 256  ;;  %p3498_p6 = scmp.lt.s32.totalorder %s30_s20, %s30_s20 }
  0x2d   :  { %p3494_p5 = scmp.ne.s32.totalorder %s30_s20, %s3493_s28  ;;  %p3499_p7 = scmp.lt.s32.totalorder %s3493_s28, %s3493_s28 }
  0x2f   :  { %p3500_p8 = por %p3499_p7, %p3498_p6 }
  0x31   :  { %p3501_p9 = pnand %p3500_p8, %p3494_p5 }
  0x33   :  { %3504 = shalt.err (!%p3501_p9)
}
  0x34   :  { %s3586_s8 = smov 128   ;;  %s3587_s18 = smov 8  }
  0x35   :  { %35 = dma.hbm_to_vmem [thread:$0]  %s4299_s0, 256, %s30_s20, [#allocation3], %s3586_s8, %s3586_s8, %s3587_s18  }
  0x36   :  { %s3588_s17 = smov [#allocation7]   ;;  %s3589_s22 = smov [#allocation10]  }
  0x37   :  { %s57_s21 = sshll.u32 %s3588_s17, 4  ;;  %s89_s23 = sshll.u32 %s3589_s22, 4  ;;  %s58_s21 = int_to_ptr.vmem [resolvable:$true] %s57_s21  ;;  %s90_s23 = int_to_ptr.vmem [resolvable:$true] %s89_s23 }
  0x38   :  { %s3505_s28 = scalar_lea.hbm %s4303_s4, 256 }
  0x39   :  { %p3506_p10 = scmp.ne.s32.totalorder %s4303_s4, %s3505_s28  ;;  %p3509_p11 = scmp.lt.u32.totalorder %s3505_s28, %s4303_s4 }
  0x3b   :  { %p3511_p12 = pnand %p3509_p11, %p3506_p10 }
  0x3d   :  { %3514 = shalt.err (!%p3511_p12)
}
  0x3e   :  { %s3515_s0 = scalar_lea.vmem %s58_s21, 256  ;;  %p3520_p0 = scmp.lt.s32.totalorder %s58_s21, %s58_s21 }
  0x3f   :  { %p3516_p13 = scmp.ne.s32.totalorder %s58_s21, %s3515_s0  ;;  %p3521_p1 = scmp.lt.s32.totalorder %s3515_s0, %s3515_s0 }
  0x41   :  { %p3522_p2 = por %p3521_p1, %p3520_p0 }
  0x43   :  { %p3523_p3 = pnand %p3522_p2, %p3516_p13 }
  0x45   :  { %3526 = shalt.err (!%p3523_p3)
}
  0x46   :  { %s4320_s20 = smov 64   ;;  %s3527_s19 = scalar_lea.hbm %s4309_s10, 32 }
  0x47   :  { %63 = dma.hbm_to_vmem [thread:$0]  %s4303_s4, 256, %s58_s21, [#allocation6], %s4320_s20, %s4320_s20, %s3581_s29  }
  0x48   :  { %p3528_p4 = scmp.ne.s32.totalorder %s4309_s10, %s3527_s19  ;;  %p3531_p5 = scmp.lt.u32.totalorder %s3527_s19, %s4309_s10 }
  0x4a   :  { %p3533_p6 = pnand %p3531_p5, %p3528_p4 }
  0x4c   :  { %3536 = shalt.err (!%p3533_p6)
}
  0x4d   :  { %s3537_s26 = scalar_lea.vmem %s90_s23, 32  ;;  %p3542_p8 = scmp.lt.s32.totalorder %s90_s23, %s90_s23 }
  0x4e   :  { %p3538_p7 = scmp.ne.s32.totalorder %s90_s23, %s3537_s26  ;;  %p3543_p9 = scmp.lt.s32.totalorder %s3537_s26, %s3537_s26 }
  0x50   :  { %p3544_p10 = por %p3543_p9, %p3542_p8 }
  0x52   :  { %p3545_p11 = pnand %p3544_p10, %p3538_p7 }
  0x54   :  { %3548 = shalt.err (!%p3545_p11)
}
  0x55   :  { %s4321_s4 = smov 1   ;;  %s4322_s29 = smov 16  }
  0x56   :  { %95 = dma.hbm_to_vmem [thread:$0]  %s4309_s10, 32, %s90_s23, [#allocation9], %s4322_s29, %s4322_s29, %s4321_s4  }
  0x57   :  { %3571 = dma.done.wait [#allocation3], 256  }
  0x58   :  { %3572 = vsyncadd [#allocation3], 4294967040 }
  0x59   :  { %3573 = dma.done.wait [#allocation6], 384  }
  0x5a   :  { %3574 = vsyncadd [#allocation6], 4294966912 }
  0x5b   :  { %3575 = dma.done.wait [#allocation9], 64  }
  0x5c   :  { %3576 = vsyncadd [#allocation9], 4294967232  ;;  %v3590_v0 = vmov 0.0   ;;  %vm3591_vm0 = vmmov 0   ;;  %v3336_v1 = vld [vmem:[#allocation7] sm:$0xff]   ;;  %v3337_v2 = vld [vmem:[#allocation7 + $0x8] sm:$0xff]  }
  0x5d   :  { %3008 = vmatprep.subr.bf16.mxu0 %v3590_v0  ;;  %3016 = vmatprep.subr.bf16.mxu1 %v3590_v0  ;;  %v3338_v3 = vld [vmem:[%s4302_s3] sm:$0xff]   ;;  %v3339_v4 = vld [vmem:[#allocation5] sm:$0xff]   ;;  %v3340_v5 = vld [vmem:[%s4302_s3 + $0x8] sm:$0xff]   ;;  %vm153_vm1 = vcmask 261120   ;;  %vm263_vm2 = vcmask 64512   ;;  %s3592_s16 = smov 96  }
  0x5e   :  { %3012 = vmatprep.mubr.msk.bf16.mxu0 %vm3591_vm0, %v3590_v0  ;;  %3020 = vmatprep.mubr.msk.bf16.mxu1 %vm3591_vm0, %v3590_v0  ;;  %v3774_v6 = vld [vmem:[#allocation2] sm:$0xff]  ;;  %v3776_v7 = vld [vmem:[#allocation2 + $0x8] sm:$0xff]  ;;  %s3593_s17 = smov 120   ;;  %vm386_vm3 = vcmask 1043456   ;;  %s3595_s22 = smov 112   ;;  %vm1167_vm4 = vcmask 130048  }
  0x5f   :  { %3009 = vmatpush3.bf16.msra.mxu0 %v3336_v1  ;;  %3017 = vmatpush3.bf16.msra.mxu1 %v3338_v3  ;;  %v200_v8 = vpack.c.bf16 %v3776_v7, %v3774_v6  ;;  %v2910_v25 = vld [vmem:[%s4301_s2] sm:$0xf]   ;;  %s3594_s2 = smov 88   ;;  %s3596_s24 = smov 80   ;;  %vm1170_vm5 = vcmask 195584   ;;  %vm1398_vm6 = vcmask 523264  }
  0x60   :  { %3010 = vmatprep.subr.bf16.mxu0 %v3590_v0  ;;  %3018 = vmatprep.subr.bf16.mxu1 %v3590_v0  ;;  %v2911_v26 = vunpack.c.0.s8 %v2910_v25  ;;  %v2912_v27 = vunpack.c.1.s8 %v2910_v25  ;;  %s3597_s25 = smov 104   ;;  %s3598_s28 = smov 72  }
  0x61   :  { %s3599_s10 = smov 24   ;;  %s3600_s21 = smov 32  }
  0x62   :  { %v126_v28 = vcvt.s32.f32 %v2911_v26  ;;  %v127_v29 = vcvt.s32.f32 %v2912_v27  ;;  %s3601_s27 = smov 56  }
  0x63   :  { %3011 = vmatpush3.bf16.msra.mxu0 %v3337_v2  ;;  %3019 = vmatpush3.bf16.msra.mxu1 %v3340_v5 }
  0x64   :  { %3024 = vmatprep.subr.bf16.mxu0 %v3590_v0  ;;  %3030 = vmatprep.subr.bf16.mxu1 %v3590_v0  ;;  %v3819_v30 = vmul.f32 -1e+30, %v126_v28  ;;  %v3821_v31 = vmul.f32 -1e+30, %v127_v29 }
  0x66   :  { %3013 = vmatmul.mubr.msk.bf16.vlgmr.msra.gmra.mrb[0].mxu0 %vm153_vm1, %v3339_v4  ;;  %3021 = vmatmul.mubr.msk.bf16.vlgmr.msra.gmra.mrb[0].mxu1 %vm153_vm1, %v200_v8 }
  0x67   :  { %3026 = vmatprep.mubr.msk.bf16.mxu0 %vm3591_vm0, %v3590_v0  ;;  %3032 = vmatprep.mubr.msk.bf16.mxu1 %vm3591_vm0, %v3590_v0 }
 0x139   :  { %v191_v9 = vpop.f32.mrb[0].mxu0  ;;  %v254_v13 = vpop.f32.mrb[0].mxu1 }
 0x13a   :  { %v3788_v10 = vpack.c.bf16 %v191_v9, %v191_v9  ;;  %v3014_v11 = vpop.f32.mrb[1].mxu0  ;;  %v3022_v17 = vpop.f32.mrb[1].mxu1  ;;  %v3799_v21 = vpack.c.bf16 %v254_v13, %v254_v13 }
 0x13b   :  { %v194_v12 = vpop.f32.mrb[2].mxu0  ;;  %v257_v18 = vpop.f32.mrb[2].mxu1 }
 0x13c   :  { %v3790_v14 = vpack.c.bf16 %v194_v12, %v194_v12  ;;  %v3015_v15 = vpop.f32.mrb[3].mxu0  ;;  %v268_v16 = vsel %vm263_vm2, %v3788_v10, 0  ;;  %v3023_v20 = vpop.f32.mrb[3].mxu1  ;;  %v3804_v22 = vpack.c.bf16 %v257_v18, %v257_v18 }
 0x13d   :  { %3025 = vmatpush3.bf16.xpose.msra.mxu0 %v268_v16 }
 0x13e   :  { %431 = vrot.lane.b32.xlu1 %v3790_v14, %s3592_s16  ;;  %v314_v19 = vsel %vm263_vm2, %v3790_v14, 0  ;;  %3036 = vmatprep.subr.bf16.mxu0 %v3590_v0 }
 0x13f   :  { %3031 = vmatpush3.bf16.xpose.msra.mxu1 %v314_v19 }
 0x140   :  { %3042 = vmatprep.subr.bf16.mxu1 %v3590_v0 }
 0x142   :  { %482 = vrot.lane.b32.xlu1 %v3788_v10, %s3593_s17 }
 0x144   :  { %3027 = vmatmul.mubr.msk.bf16.vlgmr.msra.gmra.mrb[4].mxu0 %vm263_vm2, %v3799_v21 }
 0x145   :  { %3038 = vmatprep.mubr.msk.bf16.mxu0 %vm3591_vm0, %v3590_v0 }
 0x146   :  { %3033 = vmatmul.mubr.msk.bf16.vlgmr.msra.gmra.mrb[4].mxu1 %vm263_vm2, %v3804_v22 }
 0x147   :  { %3044 = vmatprep.mubr.msk.bf16.mxu1 %vm3591_vm0, %v3590_v0 }
 0x1b0   :  { %v432_v23 = vpop.permute.xlu1 %431 }
 0x1b1   :  { %v437_v24 = vsel %vm386_vm3, %v432_v23, 0 }
 0x1b2   :  { %3043 = vmatpush3.bf16.msra.mxu1 %v437_v24 }
 0x1b3   :  { %3054 = vmatprep.subr.bf16.mxu1 %v3590_v0 }
 0x1b4   :  { %v483_v56 = vpop.permute.xlu1 %482 }
 0x1b5   :  { %v488_v63 = vsel %vm263_vm2, %v483_v56, 0 }
 0x217   :  { %v304_v32 = vpop.f32.mrb[4].mxu0 }
 0x218   :  { %v305_v33 = vadd.f32 %v304_v32, %v3819_v30  ;;  %v3028_v34 = vpop.f32.mrb[5].mxu0 }
 0x219   :  { %v307_v35 = vpop.f32.mrb[6].mxu0  ;;  %v350_v36 = vpop.f32.mrb[4].mxu1 }
 0x21a   :  { %v351_v37 = vadd.f32 %v350_v36, %v3821_v31  ;;  %v3029_v38 = vpop.f32.mrb[7].mxu0  ;;  %v3034_v39 = vpop.f32.mrb[5].mxu1  ;;  %v356_v40 = vsel %vm263_vm2, %v305_v33, -inf }
 0x21b   :  { %357 = vmax.xlane.f32.xlu0 %v356_v40  ;;  %v353_v41 = vpop.f32.mrb[6].mxu1 }
 0x21c   :  { %v3035_v42 = vpop.f32.mrb[7].mxu1  ;;  %v359_v43 = vsel %vm263_vm2, %v351_v37, -inf }
 0x21f   :  { %360 = vmax.xlane.f32.xlu0 %v359_v43 }
 0x235   :  { %381 = vrot.lane.b32.xlu0 %v3788_v10, %s3592_s16 }
 0x239   :  { %480 = vrot.lane.b32.xlu0 %v3799_v21, %s3593_s17 }
 0x2a8   :  { %v358_v44 = vpop.xlane.xlu0 %357 }
 0x2a9   :  { %v362_v45 = vsub.f32 %v305_v33, %v358_v44 }
 0x2ab   :  { %v364_v46 = vmul.f32 1.442695, %v362_v45 }
 0x2ac   :  { %v361_v47 = vpop.xlane.xlu0 %360 }
 0x2ad   :  { %3359 = vpow2.f32 %v364_v46  ;;  %v363_v48 = vsub.f32 %v351_v37, %v361_v47 }
 0x2af   :  { %v366_v49 = vmul.f32 1.442695, %v363_v48 }
 0x2b0   :  { %v382_v50 = vpop.permute.xlu0 %381 }
 0x2b1   :  { %3361 = vpow2.f32 %v366_v49  ;;  %v388_v51 = vsel %vm386_vm3, %v382_v50, 0 }
 0x2b2   :  { %3037 = vmatpush3.bf16.msra.mxu0 %v388_v51 }
 0x2b3   :  { %3048 = vmatprep.subr.bf16.mxu0 %v3590_v0 }
 0x2b4   :  { %v481_v5 = vpop.permute.xlu0 %480 }
 0x2b7   :  { %v3360_v52 = vpop.eup %3359 }
 0x2b8   :  { %v368_v53 = vsel %vm263_vm2, %v3360_v52, 0.0 }
 0x2b9   :  { %369 = vadd.xlane.f32.xlu1 %v368_v53 }
 0x2bb   :  { %v3362_v54 = vpop.eup %3361 }
 0x2bc   :  { %v371_v55 = vsel %vm263_vm2, %v3362_v54, 0.0 }
 0x2bd   :  { %372 = vadd.xlane.f32.xlu1 %v371_v55 }
 0x2ce   :  { %533 = vrot.lane.b32.xlu1 %v3790_v14, %s3593_s17 }
 0x2d2   :  { %531 = vrot.lane.b32.xlu1 %v3804_v22, %s3593_s17 }
 0x346   :  { %v370_v57 = vpop.xlane.xlu1 %369 }
 0x347   :  { %3363 = vrcp.f32 %v370_v57 }
 0x34a   :  { %v373_v58 = vpop.xlane.xlu1 %372 }
 0x34b   :  { %3365 = vrcp.f32 %v373_v58 }
 0x34e   :  { %v534_v2 = vpop.permute.xlu1 %533 }
 0x34f   :  { %v539_v4 = vsel %vm263_vm2, %v534_v2, 0 }
 0x351   :  { %v3364_v59 = vpop.eup %3363 }
 0x352   :  { %v376_v60 = vmul.f32 %v3364_v59, %v3360_v52  ;;  %v532_v8 = vpop.permute.xlu1 %531 }
 0x354   :  { %v378_v61 = vpack.c.bf16 %v376_v60, %v376_v60 }
 0x355   :  { %v3366_v62 = vpop.eup %3365 }
 0x356   :  { %v377_v1 = vmul.f32 %v3366_v62, %v3362_v54  ;;  %3039 = vmatmul.mubr.msk.bf16.vlgmr.msra.gmra.mrb[8].mxu0 %vm263_vm2, %v378_v61 }
 0x357   :  { %3049 = vmatpush3.bf16.xpose.msra.mxu0 %v488_v63  ;;  %3050 = vmatprep.mubr.msk.bf16.mxu0 %vm3591_vm0, %v3590_v0 }
 0x358   :  { %v379_v3 = vpack.c.bf16 %v377_v1, %v377_v1  ;;  %3060 = vmatprep.subr.bf16.mxu0 %v3590_v0 }
 0x35a   :  { %3045 = vmatmul.mubr.msk.bf16.vlgmr.msra.gmra.mrb[8].mxu1 %vm263_vm2, %v379_v3 }
 0x35b   :  { %3055 = vmatpush3.bf16.xpose.msra.mxu1 %v539_v4  ;;  %3056 = vmatprep.mubr.msk.bf16.mxu1 %vm3591_vm0, %v3590_v0 }
 0x35c   :  { %3066 = vmatprep.subr.bf16.mxu1 %v3590_v0 }
 0x35e   :  { %3051 = vmatmul.mubr.msk.bf16.vlgmr.msra.gmra.mrb[12].mxu0 %vm263_vm2, %v481_v5 }
 0x35f   :  { %3062 = vmatprep.mubr.msk.bf16.mxu0 %vm3591_vm0, %v3590_v0 }
 0x362   :  { %3057 = vmatmul.mubr.msk.bf16.vlgmr.msra.gmra.mrb[12].mxu1 %vm263_vm2, %v532_v8 }
 0x363   :  { %3068 = vmatprep.mubr.msk.bf16.mxu1 %vm3591_vm0, %v3590_v0 }
 0x429   :  { %v3855_v9 = vpop.f32.mrb[8].mxu0 }
 0x42a   :  { %v3040_v11 = vpop.f32.mrb[9].mxu0 }
 0x42b   :  { %v427_v12 = vpop.f32.mrb[10].mxu0 }
 0x42c   :  { %v3041_v13 = vpop.f32.mrb[11].mxu0 }
 0x42d   :  { %v3857_v15 = vpop.f32.mrb[8].mxu1 }
 0x42e   :  { %v3046_v16 = vpop.f32.mrb[9].mxu1 }
 0x42f   :  { %v476_v17 = vpop.f32.mrb[10].mxu1 }
 0x430   :  { %v3047_v18 = vpop.f32.mrb[11].mxu1 }
 0x431   :  { %v524_v19 = vpop.f32.mrb[12].mxu0 }
 0x432   :  { %v525_v20 = vadd.f32 %v524_v19, %v3819_v30  ;;  %v3052_v23 = vpop.f32.mrb[13].mxu0 }
 0x433   :  { %v527_v24 = vpop.f32.mrb[14].mxu0 }
 0x434   :  { %v3053_v25 = vpop.f32.mrb[15].mxu0  ;;  %v581_v26 = vsel %vm263_vm2, %v525_v20, -inf }
 0x435   :  { %582 = vmax.xlane.f32.xlu0 %v581_v26  ;;  %v575_v27 = vpop.f32.mrb[12].mxu1 }
 0x436   :  { %v576_v28 = vadd.f32 %v575_v27, %v3821_v31  ;;  %v3058_v29 = vpop.f32.mrb[13].mxu1 }
 0x437   :  { %v578_v32 = vpop.f32.mrb[14].mxu1 }
 0x438   :  { %v3059_v33 = vpop.f32.mrb[15].mxu1  ;;  %v584_v34 = vsel %vm263_vm2, %v576_v28, -inf }
 0x439   :  { %585 = vmax.xlane.f32.xlu1 %v584_v34 }
 0x44a   :  { %653 = vrot.lane.b32.xlu1 %v3790_v14, %s3594_s2 }
 0x44e   :  { %703 = vrot.lane.b32.xlu1 %v3788_v10, %s3595_s22 }
 0x452   :  { %753 = vrot.lane.b32.xlu1 %v3790_v14, %s3595_s22 }
 0x456   :  { %751 = vrot.lane.b32.xlu1 %v3804_v22, %s3595_s22 }
 0x4c2   :  { %v583_v35 = vpop.xlane.xlu0 %582 }
 0x4c3   :  { %v587_v36 = vsub.f32 %v525_v20, %v583_v35 }
 0x4c5   :  { %v589_v37 = vmul.f32 1.442695, %v587_v36 }
 0x4c6   :  { %v586_v38 = vpop.xlane.xlu1 %585 }
 0x4c7   :  { %3367 = vpow2.f32 %v589_v37  ;;  %v588_v39 = vsub.f32 %v576_v28, %v586_v38 }
 0x4c9   :  { %v591_v40 = vmul.f32 1.442695, %v588_v39 }
 0x4ca   :  { %v654_v41 = vpop.permute.xlu1 %653 }
 0x4cb   :  { %3369 = vpow2.f32 %v591_v40  ;;  %v659_v42 = vsel %vm386_vm3, %v654_v41, 0 }
 0x4cc   :  { %3067 = vmatpush3.bf16.msra.mxu1 %v659_v42 }
 0x4cd   :  { %3078 = vmatprep.subr.bf16.mxu1 %v3590_v0 }
 0x4ce   :  { %v704_v52 = vpop.permute.xlu1 %703 }
 0x4cf   :  { %v709_v58 = vsel %vm263_vm2, %v704_v52, 0 }
 0x4d1   :  { %v3368_v43 = vpop.eup %3367 }
 0x4d2   :  { %v593_v44 = vsel %vm263_vm2, %v3368_v43, 0.0  ;;  %v754_v57 = vpop.permute.xlu1 %753 }
 0x4d3   :  { %594 = vadd.xlane.f32.xlu0 %v593_v44  ;;  %v759_v60 = vsel %vm263_vm2, %v754_v57, 0 }
 0x4d5   :  { %v3370_v45 = vpop.eup %3369 }
 0x4d6   :  { %v596_v46 = vsel %vm263_vm2, %v3370_v45, 0.0  ;;  %v752_v62 = vpop.permute.xlu1 %751 }
 0x4d7   :  { %597 = vadd.xlane.f32.xlu0 %v596_v46 }
 0x4ed   :  { %605 = vrot.lane.b32.xlu0 %v3788_v10, %s3594_s2 }
 0x4f1   :  { %701 = vrot.lane.b32.xlu0 %v3799_v21, %s3595_s22 }
 0x560   :  { %v595_v47 = vpop.xlane.xlu0 %594 }
 0x561   :  { %3371 = vrcp.f32 %v595_v47 }
 0x564   :  { %v598_v48 = vpop.xlane.xlu0 %597 }
 0x565   :  { %3373 = vrcp.f32 %v598_v48 }
 0x568   :  { %v606_v49 = vpop.permute.xlu0 %605 }
 0x569   :  { %v611_v50 = vsel %vm386_vm3, %v606_v49, 0 }
 0x56a   :  { %3061 = vmatpush3.bf16.msra.mxu0 %v611_v50 }
 0x56b   :  { %v3372_v51 = vpop.eup %3371  ;;  %3072 = vmatprep.subr.bf16.mxu0 %v3590_v0 }
 0x56c   :  { %v601_v53 = vmul.f32 %v3372_v51, %v3368_v43  ;;  %v702_v61 = vpop.permute.xlu0 %701 }
 0x56e   :  { %v603_v54 = vpack.c.bf16 %v601_v53, %v601_v53 }
 0x56f   :  { %v3374_v55 = vpop.eup %3373 }
 0x570   :  { %v602_v56 = vmul.f32 %v3374_v55, %v3370_v45  ;;  %3063 = vmatmul.mubr.msk.bf16.vlgmr.msra.gmra.mrb[16].mxu0 %vm263_vm2, %v603_v54 }
 0x571   :  { %3074 = vmatprep.mubr.msk.bf16.mxu0 %vm3591_vm0, %v3590_v0 }
 0x572   :  { %v604_v59 = vpack.c.bf16 %v602_v56, %v602_v56 }
 0x573   :  { %3073 = vmatpush3.bf16.xpose.msra.mxu0 %v709_v58 }
 0x574   :  { %3069 = vmatmul.mubr.msk.bf16.vlgmr.msra.gmra.mrb[16].mxu1 %vm263_vm2, %v604_v59  ;;  %3084 = vmatprep.subr.bf16.mxu0 %v3590_v0 }
 0x575   :  { %3079 = vmatpush3.bf16.xpose.msra.mxu1 %v759_v60  ;;  %3080 = vmatprep.mubr.msk.bf16.mxu1 %vm3591_vm0, %v3590_v0 }
 0x576   :  { %3090 = vmatprep.subr.bf16.mxu1 %v3590_v0 }
 0x57a   :  { %3075 = vmatmul.mubr.msk.bf16.vlgmr.msra.gmra.mrb[20].mxu0 %vm263_vm2, %v702_v61 }
 0x57b   :  { %3086 = vmatprep.mubr.msk.bf16.mxu0 %vm3591_vm0, %v3590_v0 }
 0x57c   :  { %3081 = vmatmul.mubr.msk.bf16.vlgmr.msra.gmra.mrb[20].mxu1 %vm263_vm2, %v752_v62 }
 0x57d   :  { %3092 = vmatprep.mubr.msk.bf16.mxu1 %vm3591_vm0, %v3590_v0 }
 0x643   :  { %v3895_v63 = vpop.f32.mrb[16].mxu0 }
 0x644   :  { %v3064_v1 = vpop.f32.mrb[17].mxu0 }
 0x645   :  { %v650_v2 = vpop.f32.mrb[18].mxu0 }
 0x646   :  { %v3065_v3 = vpop.f32.mrb[19].mxu0 }
 0x647   :  { %v3897_v4 = vpop.f32.mrb[16].mxu1 }
 0x648   :  { %v3306_v5 = vpack.i.bf16 %v3897_v4, %v3895_v63  ;;  %v3070_v8 = vpop.f32.mrb[17].mxu1 }
 0x649   :  { %v698_v11 = vpop.f32.mrb[18].mxu1 }
 0x64a   :  { %v3071_v12 = vpop.f32.mrb[19].mxu1 }
 0x64d   :  { %v745_v13 = vpop.f32.mrb[20].mxu0 }
 0x64e   :  { %v746_v16 = vadd.f32 %v745_v13, %v3819_v30  ;;  %v3076_v17 = vpop.f32.mrb[21].mxu0 }
 0x64f   :  { %v748_v18 = vpop.f32.mrb[22].mxu0  ;;  %v795_v19 = vpop.f32.mrb[20].mxu1 }
 0x650   :  { %v796_v20 = vadd.f32 %v795_v19, %v3821_v31  ;;  %v3077_v23 = vpop.f32.mrb[23].mxu0  ;;  %v3082_v24 = vpop.f32.mrb[21].mxu1  ;;  %v801_v25 = vsel %vm263_vm2, %v746_v16, -inf }
 0x651   :  { %802 = vmax.xlane.f32.xlu0 %v801_v25  ;;  %v798_v26 = vpop.f32.mrb[22].mxu1 }
 0x652   :  { %v3083_v27 = vpop.f32.mrb[23].mxu1  ;;  %v804_v28 = vsel %vm263_vm2, %v796_v20, -inf }
 0x653   :  { %805 = vmax.xlane.f32.xlu1 %v804_v28 }
 0x664   :  { %873 = vrot.lane.b32.xlu1 %v3790_v14, %s3596_s24 }
 0x668   :  { %923 = vrot.lane.b32.xlu1 %v3788_v10, %s3597_s25 }
 0x66c   :  { %973 = vrot.lane.b32.xlu1 %v3790_v14, %s3597_s25 }
 0x670   :  { %971 = vrot.lane.b32.xlu1 %v3804_v22, %s3597_s25 }
 0x6de   :  { %v803_v29 = vpop.xlane.xlu0 %802 }
 0x6df   :  { %v807_v32 = vsub.f32 %v746_v16, %v803_v29 }
 0x6e0   :  { %v806_v33 = vpop.xlane.xlu1 %805 }
 0x6e1   :  { %v809_v34 = vmul.f32 1.442695, %v807_v32  ;;  %v808_v35 = vsub.f32 %v796_v20, %v806_v33 }
 0x6e3   :  { %3375 = vpow2.f32 %v809_v34  ;;  %v811_v36 = vmul.f32 1.442695, %v808_v35 }
 0x6e4   :  { %v874_v37 = vpop.permute.xlu1 %873 }
 0x6e5   :  { %3377 = vpow2.f32 %v811_v36  ;;  %v879_v38 = vsel %vm386_vm3, %v874_v37, 0 }
 0x6e6   :  { %3091 = vmatpush3.bf16.msra.mxu1 %v879_v38 }
 0x6e7   :  { %3102 = vmatprep.subr.bf16.mxu1 %v3590_v0 }
 0x6e8   :  { %v924_v47 = vpop.permute.xlu1 %923 }
 0x6ec   :  { %v974_v52 = vpop.permute.xlu1 %973 }
 0x6ed   :  { %v3376_v39 = vpop.eup %3375  ;;  %v979_v54 = vsel %vm263_vm2, %v974_v52, 0 }
 0x6ee   :  { %v813_v40 = vsel %vm263_vm2, %v3376_v39, 0.0 }
 0x6ef   :  { %v3378_v41 = vpop.eup %3377  ;;  %814 = vadd.xlane.f32.xlu0 %v813_v40 }
 0x6f0   :  { %v816_v22 = vsel %vm263_vm2, %v3378_v41, 0.0  ;;  %v972_v56 = vpop.permute.xlu1 %971 }
 0x6f3   :  { %817 = vadd.xlane.f32.xlu0 %v816_v22 }
 0x709   :  { %825 = vrot.lane.b32.xlu0 %v3788_v10, %s3596_s24 }
 0x70d   :  { %921 = vrot.lane.b32.xlu0 %v3799_v21, %s3597_s25  ;;  %v929_v21 = vsel %vm263_vm2, %v924_v47, 0  ;;  %v3342_v47 = vld [vmem:[%s4304_s5 + $0x8] sm:$0xff]  }
 0x77c   :  { %v815_v42 = vpop.xlane.xlu0 %814 }
 0x77d   :  { %3379 = vrcp.f32 %v815_v42 }
 0x780   :  { %v818_v43 = vpop.xlane.xlu0 %817 }
 0x781   :  { %3381 = vrcp.f32 %v818_v43 }
 0x784   :  { %v826_v44 = vpop.permute.xlu0 %825 }
 0x785   :  { %v831_v45 = vsel %vm386_vm3, %v826_v44, 0 }
 0x786   :  { %3085 = vmatpush3.bf16.msra.mxu0 %v831_v45 }
 0x787   :  { %v3380_v46 = vpop.eup %3379  ;;  %3096 = vmatprep.subr.bf16.mxu0 %v3590_v0 }
 0x788   :  { %v821_v48 = vmul.f32 %v3380_v46, %v3376_v39  ;;  %v922_v55 = vpop.permute.xlu0 %921  ;;  %v3341_v46 = vld [vmem:[%s4304_s5] sm:$0xff]  }
 0x78a   :  { %v823_v49 = vpack.c.bf16 %v821_v48, %v821_v48 }
 0x78b   :  { %v3382_v50 = vpop.eup %3381 }
 0x78c   :  { %v822_v51 = vmul.f32 %v3382_v50, %v3378_v41  ;;  %3087 = vmatmul.mubr.msk.bf16.vlgmr.msra.gmra.mrb[24].mxu0 %vm263_vm2, %v823_v49 }
 0x78d   :  { %3098 = vmatprep.mubr.msk.bf16.mxu0 %vm3591_vm0, %v3590_v0 }
 0x78e   :  { %v824_v53 = vpack.c.bf16 %v822_v51, %v822_v51 }
 0x78f   :  { %3097 = vmatpush3.bf16.xpose.msra.mxu0 %v929_v21 }
 0x790   :  { %3093 = vmatmul.mubr.msk.bf16.vlgmr.msra.gmra.mrb[24].mxu1 %vm263_vm2, %v824_v53  ;;  %3108 = vmatprep.subr.bf16.mxu0 %v3590_v0 }
 0x791   :  { %3103 = vmatpush3.bf16.xpose.msra.mxu1 %v979_v54  ;;  %3104 = vmatprep.mubr.msk.bf16.mxu1 %vm3591_vm0, %v3590_v0 }
 0x792   :  { %3114 = vmatprep.subr.bf16.mxu1 %v3590_v0 }
 0x796   :  { %3099 = vmatmul.mubr.msk.bf16.vlgmr.msra.gmra.mrb[28].mxu0 %vm263_vm2, %v922_v55 }
 0x797   :  { %3110 = vmatprep.mubr.msk.bf16.mxu0 %vm3591_vm0, %v3590_v0 }
 0x798   :  { %3105 = vmatmul.mubr.msk.bf16.vlgmr.msra.gmra.mrb[28].mxu1 %vm263_vm2, %v972_v56 }
 0x799   :  { %3116 = vmatprep.mubr.msk.bf16.mxu1 %vm3591_vm0, %v3590_v0 }
 0x85f   :  { %v867_v57 = vpop.f32.mrb[24].mxu0 }
 0x860   :  { %v3088_v58 = vpop.f32.mrb[25].mxu0 }
 0x861   :  { %v870_v59 = vpop.f32.mrb[26].mxu0 }
 0x862   :  { %v3089_v60 = vpop.f32.mrb[27].mxu0 }
 0x863   :  { %v915_v61 = vpop.f32.mrb[24].mxu1 }
 0x864   :  { %v3311_v62 = vpack.i.bf16 %v915_v61, %v867_v57  ;;  %v3094_v1 = vpop.f32.mrb[25].mxu1 }
 0x865   :  { %v918_v2 = vpop.f32.mrb[26].mxu1 }
 0x866   :  { %v3095_v3 = vpop.f32.mrb[27].mxu1 }
 0x869   :  { %v965_v8 = vpop.f32.mrb[28].mxu0 }
 0x86a   :  { %v966_v11 = vadd.f32 %v965_v8, %v3819_v30  ;;  %v3100_v12 = vpop.f32.mrb[29].mxu0 }
 0x86b   :  { %v968_v13 = vpop.f32.mrb[30].mxu0  ;;  %v1015_v16 = vpop.f32.mrb[28].mxu1 }
 0x86c   :  { %v1016_v17 = vadd.f32 %v1015_v16, %v3821_v31  ;;  %v3101_v18 = vpop.f32.mrb[31].mxu0  ;;  %v3106_v19 = vpop.f32.mrb[29].mxu1  ;;  %v1021_v20 = vsel %vm263_vm2, %v966_v11, -inf }
 0x86d   :  { %1022 = vmax.xlane.f32.xlu0 %v1021_v20  ;;  %v1018_v23 = vpop.f32.mrb[30].mxu1 }
 0x86e   :  { %v3107_v24 = vpop.f32.mrb[31].mxu1  ;;  %v1024_v25 = vsel %vm263_vm2, %v1016_v17, -inf }
 0x86f   :  { %1025 = vmax.xlane.f32.xlu1 %v1024_v25 }
 0x880   :  { %1093 = vrot.lane.b32.xlu1 %v3790_v14, %s3598_s28 }
 0x884   :  { %3307 = vrot.lane.b32.xlu1 %v3306_v5, %s3587_s18 }
 0x888   :  { %3312 = vrot.lane.b32.xlu1 %v3311_v62, %s4322_s29 }
 0x8fa   :  { %v1023_v26 = vpop.xlane.xlu0 %1022 }
 0x8fb   :  { %v1027_v27 = vsub.f32 %v966_v11, %v1023_v26 }
 0x8fc   :  { %v1026_v28 = vpop.xlane.xlu1 %1025 }
 0x8fd   :  { %v1029_v29 = vmul.f32 1.442695, %v1027_v27  ;;  %v1028_v32 = vsub.f32 %v1016_v17, %v1026_v28 }
 0x8ff   :  { %3383 = vpow2.f32 %v1029_v29  ;;  %v1031_v33 = vmul.f32 1.442695, %v1028_v32 }
 0x900   :  { %v1094_v34 = vpop.permute.xlu1 %1093 }
 0x901   :  { %3385 = vpow2.f32 %v1031_v33  ;;  %v1099_v35 = vsel %vm386_vm3, %v1094_v34, 0 }
 0x902   :  { %3115 = vmatpush3.bf16.msra.mxu1 %v1099_v35 }
 0x903   :  { %3128 = vmatprep.subr.bf16.mxu1 %v3590_v0 }
 0x904   :  { %v3308_v56 = vpop.permute.xlu1 %3307 }
 0x905   :  { %v3310_v58 = vunpack.i.h.bf16 %v3308_v56  ;;  %v3309_v59 = vunpack.i.l.bf16 %v3308_v56  ;;  %v3348_v56 = vld [vmem:[%s4310_s11 + $0x18] sm:$0xff]  }
 0x907   :  { %v1166_v1 = vsel %vm263_vm2, %v3857_v15, %v3310_v58  ;;  %v1165_v2 = vsel %vm263_vm2, %v3855_v9, %v3309_v59  ;;  %v2829_v9 = vld [vmem:[%s4305_s6] ss:$0 sm:$0xff] }
 0x908   :  { %v3313_v57 = vpop.permute.xlu1 %3312 }
 0x909   :  { %v3384_v36 = vpop.eup %3383  ;;  %v3315_v60 = vunpack.i.h.bf16 %v3313_v57  ;;  %v3314_v61 = vunpack.i.l.bf16 %v3313_v57  ;;  %v2835_v57 = vld [vmem:[#allocation10] ss:$0 sm:$0xff] }
 0x90a   :  { %v1033_v63 = vsel %vm263_vm2, %v3384_v36, 0.0 }
 0x90b   :  { %v3386_v4 = vpop.eup %3385  ;;  %1034 = vadd.xlane.f32.xlu0 %v1033_v63  ;;  %v1168_v11 = vsel %vm1167_vm4, %v1165_v2, %v3314_v61  ;;  %v1169_v12 = vsel %vm1167_vm4, %v1166_v1, %v3315_v60 }
 0x90c   :  { %v1036_v5 = vsel %vm263_vm2, %v3386_v4, 0.0 }
 0x90f   :  { %1037 = vadd.xlane.f32.xlu0 %v1036_v5 }
 0x925   :  { %1045 = vrot.lane.b32.xlu0 %v3788_v10, %s3598_s28 }
 0x998   :  { %v1035_v37 = vpop.xlane.xlu0 %1034 }
 0x999   :  { %3387 = vrcp.f32 %v1035_v37  ;;  %v3344_v37 = vld [vmem:[%s4308_s9 + $0x8] sm:$0xff]  }
 0x99c   :  { %v1038_v38 = vpop.xlane.xlu0 %1037 }
 0x99d   :  { %3389 = vrcp.f32 %v1038_v38  ;;  %v3345_v38 = vld [vmem:[%s4310_s11] sm:$0xff]  }
 0x9a0   :  { %v1046_v39 = vpop.permute.xlu0 %1045 }
 0x9a1   :  { %v1051_v40 = vsel %vm386_vm3, %v1046_v39, 0  ;;  %v3346_v39 = vld [vmem:[%s4310_s11 + $0x8] sm:$0xff]  }
 0x9a2   :  { %3109 = vmatpush3.bf16.msra.mxu0 %v1051_v40 }
 0x9a3   :  { %v3388_v41 = vpop.eup %3387  ;;  %3120 = vmatprep.subr.bf16.mxu0 %v3590_v0 }
 0x9a4   :  { %v1041_v22 = vmul.f32 %v3388_v41, %v3384_v36 }
 0x9a6   :  { %v1043_v42 = vpack.c.bf16 %v1041_v22, %v1041_v22 }
 0x9a7   :  { %v3390_v43 = vpop.eup %3389 }
 0x9a8   :  { %v1042_v44 = vmul.f32 %v3390_v43, %v3386_v4  ;;  %3111 = vmatmul.mubr.msk.bf16.vlgmr.msra.gmra.mrb[32].mxu0 %vm263_vm2, %v1043_v42 }
 0x9a9   :  { %3124 = vmatprep.mubr.msk.bf16.mxu0 %vm3591_vm0, %v3590_v0  ;;  %3121 = vmatpush3.bf16.msra.mxu0 %v3341_v46 }
 0x9aa   :  { %v1044_v45 = vpack.c.bf16 %v1042_v44, %v1042_v44  ;;  %3122 = vmatprep.subr.bf16.mxu0 %v3590_v0 }
 0x9ac   :  { %3117 = vmatmul.mubr.msk.bf16.vlgmr.msra.gmra.mrb[32].mxu1 %vm263_vm2, %v1044_v45 }
 0x9ad   :  { %3132 = vmatprep.mubr.msk.bf16.mxu1 %vm3591_vm0, %v3590_v0  ;;  %3123 = vmatpush3.bf16.msra.mxu0 %v3342_v47  ;;  %v2833_v47 = vld [vmem:[%s4306_s7] ss:$0 sm:$0xff] }
 0x9ae   :  { %3136 = vmatprep.subr.bf16.mxu0 %v3590_v0 }
 0xa7b   :  { %v1087_v48 = vpop.f32.mrb[32].mxu0 }
 0xa7c   :  { %v3112_v49 = vpop.f32.mrb[33].mxu0 }
 0xa7d   :  { %v1090_v50 = vpop.f32.mrb[34].mxu0 }
 0xa7e   :  { %v3113_v51 = vpop.f32.mrb[35].mxu0 }
 0xa7f   :  { %v1135_v52 = vpop.f32.mrb[32].mxu1  ;;  %v2834_v51 = vld [vmem:[#allocation8] ss:$0 sm:$0xff] }
 0xa80   :  { %v3316_v21 = vpack.i.bf16 %v1135_v52, %v1087_v48  ;;  %v3118_v53 = vpop.f32.mrb[33].mxu1 }
 0xa81   :  { %v1138_v54 = vpop.f32.mrb[34].mxu1 }
 0xa82   :  { %3317 = vrot.lane.b32.xlu0 %v3316_v21, %s3599_s10  ;;  %v3119_v55 = vpop.f32.mrb[35].mxu1 }
 0xa83   :  { %v3347_v55 = vld [vmem:[%s4310_s11 + $0x10] sm:$0xff]  }
 0xaf4   :  { %v3318_v62 = vpop.permute.xlu0 %3317 }
 0xaf5   :  { %v3320_v3 = vunpack.i.h.bf16 %v3318_v62  ;;  %v3319_v8 = vunpack.i.l.bf16 %v3318_v62 }
 0xaf7   :  { %v1172_v13 = vsel %vm1170_vm5, %v1169_v12, %v3320_v3  ;;  %v1171_v16 = vsel %vm1170_vm5, %v1168_v11, %v3319_v8  ;;  %v2839_v11 = vld [vmem:[%s4311_s12] ss:$0 sm:$0xff] }
 0xaf8   :  { %v1173_v17 = vpack.c.bf16 %v1172_v13, %v1171_v16 }
 0xafa   :  { %3125 = vmatmul.mubr.msk.bf16.vlgmr.msra.gmra.mrb[36].mxu0 %vm153_vm1, %v1173_v17 }
 0xafb   :  { %3144 = vmatprep.mubr.msk.bf16.mxu0 %vm3591_vm0, %v3590_v0  ;;  %3137 = vmatpush3.bf16.msra.mxu0 %v3345_v38 }
 0xafc   :  { %3138 = vmatprep.subr.bf16.mxu0 %v3590_v0 }
 0xaff   :  { %3139 = vmatpush3.bf16.msra.mxu0 %v3346_v39 }
 0xb00   :  { %3140 = vmatprep.subr.bf16.mxu0 %v3590_v0 }
 0xb03   :  { %3141 = vmatpush3.bf16.msra.mxu0 %v3347_v55 }
 0xb04   :  { %3142 = vmatprep.subr.bf16.mxu0 %v3590_v0 }
 0xb07   :  { %3143 = vmatpush3.bf16.msra.mxu0 %v3348_v56 }
 0xb08   :  { %3162 = vmatprep.subr.bf16.mxu0 %v3590_v0 }
 0xbcd   :  { %v1234_v15 = vpop.f32.mrb[36].mxu0 }
 0xbce   :  { %v1235_v18 = vadd.f32 %v2829_v9, %v1234_v15  ;;  %v3126_v19 = vpop.f32.mrb[37].mxu0 }
 0xbcf   :  { %v1237_v20 = vpop.f32.mrb[38].mxu0 }
 0xbd0   :  { %v1238_v23 = vadd.f32 %v2829_v9, %v1237_v20  ;;  %v3127_v24 = vpop.f32.mrb[39].mxu0  ;;  %v1241_v25 = vadd.f32 %v1235_v18, %v3774_v6 }
 0xbd2   :  { %v1245_v26 = vsel %vm153_vm1, %v1241_v25, 0.0  ;;  %v1242_v27 = vadd.f32 %v1238_v23, %v3776_v7  ;;  %v3343_v7 = vld [vmem:[%s4308_s9] sm:$0xff]  }
 0xbd3   :  { %1246 = vadd.xlane.f32.xlu1 %v1245_v26  ;;  %3129 = vmatpush3.bf16.msra.mxu1 %v3343_v7 }
 0xbd4   :  { %v1248_v28 = vsel %vm153_vm1, %v1242_v27, 0.0  ;;  %3130 = vmatprep.subr.bf16.mxu1 %v3590_v0 }
 0xbd5   :  { %1249 = vadd.xlane.f32.xlu0 %v1248_v28 }
 0xbd7   :  { %3131 = vmatpush3.bf16.msra.mxu1 %v3344_v37 }
 0xbd8   :  { %3148 = vmatprep.subr.bf16.mxu1 %v3590_v0 }
 0xc60   :  { %v1247_v29 = vpop.xlane.xlu1 %1246 }
 0xc61   :  { %v1252_v32 = vmul.f32 0.03125, %v1247_v29 }
 0xc62   :  { %v1250_v33 = vpop.xlane.xlu0 %1249 }
 0xc63   :  { %v1254_v34 = vsub.f32 %v1241_v25, %v1252_v32  ;;  %v1253_v35 = vmul.f32 0.03125, %v1250_v33 }
 0xc65   :  { %v1255_v36 = vsub.f32 %v1242_v27, %v1253_v35  ;;  %v1256_v63 = vmul.f32 %v1254_v34, %v1254_v34 }
 0xc67   :  { %v1258_v4 = vsel %vm153_vm1, %v1256_v63, 0.0  ;;  %v1257_v5 = vmul.f32 %v1255_v36, %v1255_v36  ;;  %v3350_v63 = vld [vmem:[%s4302_s3 + $0x18] sm:$0xff]  }
 0xc68   :  { %1259 = vadd.xlane.f32.xlu0 %v1258_v4 }
 0xc69   :  { %v1261_v6 = vsel %vm153_vm1, %v1257_v5, 0.0 }
 0xc6c   :  { %1262 = vadd.xlane.f32.xlu0 %v1261_v6 }
 0xcf5   :  { %v1260_v40 = vpop.xlane.xlu0 %1259 }
 0xcf6   :  { %v1264_v41 = vmul.f32 0.03125, %v1260_v40 }
 0xcf8   :  { %v1266_v22 = vadd.f32 1e-05, %v1264_v41 }
 0xcf9   :  { %v1263_v42 = vpop.xlane.xlu0 %1262 }
 0xcfa   :  { %3391 = vrsqrt.f32 %v1266_v22  ;;  %v1265_v43 = vmul.f32 0.03125, %v1263_v42  ;;  %v2845_v22 = vld [vmem:[%s4312_s13] ss:$0 sm:$0xff] }
 0xcfc   :  { %v1267_v44 = vadd.f32 1e-05, %v1265_v43 }
 0xcfe   :  { %3393 = vrsqrt.f32 %v1267_v44 }
 0xd04   :  { %v3392_v45 = vpop.eup %3391 }
 0xd05   :  { %v1270_v46 = vmul.f32 %v3392_v45, %v1254_v34 }
 0xd07   :  { %v1278_v49 = vmul.f32 %v2833_v47, %v1270_v46  ;;  %v2846_v46 = vld [vmem:[%s4313_s14] ss:$0 sm:$0xff] }
 0xd08   :  { %v3394_v48 = vpop.eup %3393 }
 0xd09   :  { %v1271_v50 = vmul.f32 %v3394_v48, %v1255_v36  ;;  %v1286_v21 = vadd.f32 %v2834_v51, %v1278_v49  ;;  %v3349_v36 = vld [vmem:[%s4302_s3 + $0x10] sm:$0xff]  }
 0xd0b   :  { %v1279_v52 = vmul.f32 %v2833_v47, %v1271_v50 }
 0xd0d   :  { %v1287_v53 = vadd.f32 %v2834_v51, %v1279_v52 }
 0xd0f   :  { %v1288_v54 = vpack.c.bf16 %v1287_v53, %v1286_v21 }
 0xd11   :  { %3133 = vmatmul.mubr.msk.bf16.vlgmr.msra.gmra.mrb[36].mxu1 %vm153_vm1, %v1288_v54 }
 0xd12   :  { %3152 = vmatprep.mubr.msk.bf16.mxu1 %vm3591_vm0, %v3590_v0  ;;  %3149 = vmatpush3.bf16.msra.mxu1 %v3349_v36 }
 0xd13   :  { %3150 = vmatprep.subr.bf16.mxu1 %v3590_v0 }
 0xd16   :  { %3151 = vmatpush3.bf16.msra.mxu1 %v3350_v63 }
 0xd17   :  { %3156 = vmatprep.subr.bf16.mxu1 %v3590_v0 }
 0xde4   :  { %v1349_v58 = vpop.f32.mrb[36].mxu1 }
 0xde5   :  { %v1350_v59 = vadd.f32 %v2835_v57, %v1349_v58  ;;  %v3134_v60 = vpop.f32.mrb[37].mxu1 }
 0xde6   :  { %v1352_v61 = vpop.f32.mrb[38].mxu1 }
 0xde7   :  { %v1353_v62 = vadd.f32 %v2835_v57, %v1352_v61  ;;  %v3135_v1 = vpop.f32.mrb[39].mxu1  ;;  %v1356_v2 = vmax.f32 %v1350_v59, 0.0 }
 0xde9   :  { %v1357_v3 = vmax.f32 %v1353_v62, 0.0 }
 0xdeb   :  { %v1358_v8 = vpack.c.bf16 %v1357_v3, %v1356_v2 }
 0xded   :  { %3145 = vmatmul.mubr.msk.bf16.vlgmr.msra.gmra.mrb[40].mxu0 %vm1398_vm6, %v1358_v8 }
 0xdee   :  { %3164 = vmatprep.mubr.msk.bf16.mxu0 %vm3591_vm0, %v3590_v0 }
 0xec0   :  { %v1436_v12 = vpop.f32.mrb[40].mxu0 }
 0xec1   :  { %v1437_v13 = vadd.f32 %v2839_v11, %v1436_v12  ;;  %v3146_v16 = vpop.f32.mrb[41].mxu0 }
 0xec2   :  { %v1439_v17 = vpop.f32.mrb[42].mxu0 }
 0xec3   :  { %v1440_v9 = vadd.f32 %v2839_v11, %v1439_v17  ;;  %v3147_v15 = vpop.f32.mrb[43].mxu0  ;;  %v1443_v18 = vadd.f32 %v1437_v13, %v1286_v21 }
 0xec5   :  { %v1447_v19 = vsel %vm153_vm1, %v1443_v18, 0.0  ;;  %v1444_v20 = vadd.f32 %v1440_v9, %v1287_v53 }
 0xec6   :  { %1448 = vadd.xlane.f32.xlu1 %v1447_v19 }
 0xec7   :  { %v1450_v23 = vsel %vm153_vm1, %v1444_v20, 0.0 }
 0xec8   :  { %1451 = vadd.xlane.f32.xlu0 %v1450_v23 }
 0xf53   :  { %v1449_v24 = vpop.xlane.xlu1 %1448 }
 0xf54   :  { %v1453_v25 = vmul.f32 0.03125, %v1449_v24 }
 0xf55   :  { %v1452_v26 = vpop.xlane.xlu0 %1451 }
 0xf56   :  { %v1455_v27 = vsub.f32 %v1443_v18, %v1453_v25  ;;  %v1454_v28 = vmul.f32 0.03125, %v1452_v26 }
 0xf58   :  { %v1456_v29 = vsub.f32 %v1444_v20, %v1454_v28  ;;  %v1457_v32 = vmul.f32 %v1455_v27, %v1455_v27 }
 0xf5a   :  { %v1459_v33 = vsel %vm153_vm1, %v1457_v32, 0.0  ;;  %v1458_v34 = vmul.f32 %v1456_v29, %v1456_v29 }
 0xf5b   :  { %1460 = vadd.xlane.f32.xlu1 %v1459_v33 }
 0xf5c   :  { %v1462_v35 = vsel %vm153_vm1, %v1458_v34, 0.0 }
 0xf5d   :  { %1463 = vadd.xlane.f32.xlu0 %v1462_v35 }
 0xf6c   :  { %1553 = vrot.lane.b32.xlu1 %v3788_v10, %s4320_s20 }
 0xf73   :  { %1601 = vrot.lane.b32.xlu0 %v3790_v14, %s4320_s20 }
 0xfe8   :  { %v1461_v4 = vpop.xlane.xlu1 %1460 }
 0xfe9   :  { %v1465_v5 = vmul.f32 0.03125, %v1461_v4 }
 0xfea   :  { %v1464_v6 = vpop.xlane.xlu0 %1463 }
 0xfeb   :  { %v1467_v7 = vadd.f32 1e-05, %v1465_v5  ;;  %v1466_v37 = vmul.f32 0.03125, %v1464_v6 }
 0xfec   :  { %v1554_v50 = vpop.permute.xlu1 %1553 }
 0xfed   :  { %3395 = vrsqrt.f32 %v1467_v7  ;;  %v1468_v38 = vadd.f32 1e-05, %v1466_v37  ;;  %v1559_v52 = vsel %vm263_vm2, %v1554_v50, 0 }
 0xfee   :  { %v1602_v39 = vpop.permute.xlu0 %1601 }
 0xfef   :  { %3397 = vrsqrt.f32 %v1468_v38  ;;  %v1607_v40 = vsel %vm263_vm2, %v1602_v39, 0 }
 0xff0   :  { %3163 = vmatpush3.bf16.xpose.msra.mxu0 %v1607_v40 }
 0xff1   :  { %3174 = vmatprep.subr.bf16.mxu0 %v3590_v0 }
 0xff7   :  { %v3396_v41 = vpop.eup %3395 }
 0xff8   :  { %v1471_v42 = vmul.f32 %v3396_v41, %v1455_v27 }
 0xff9   :  { %v3398_v43 = vpop.eup %3397 }
 0xffa   :  { %v1479_v44 = vmul.f32 %v2845_v22, %v1471_v42  ;;  %v1472_v45 = vmul.f32 %v3398_v43, %v1456_v29 }
 0xffc   :  { %v1480_v47 = vmul.f32 %v2845_v22, %v1472_v45  ;;  %v4049_v48 = vadd.f32 %v2846_v46, %v1479_v44 }
 0xffe   :  { %v4051_v49 = vadd.f32 %v2846_v46, %v1480_v47 }
0x1000   :  { %v1489_v51 = vpack.c.bf16 %v4051_v49, %v4049_v48 }
0x1002   :  { %3153 = vmatmul.mubr.msk.bf16.vlgmr.msra.gmra.mrb[40].mxu1 %vm153_vm1, %v1489_v51 }
0x1003   :  { %3157 = vmatpush3.bf16.xpose.msra.mxu1 %v1559_v52  ;;  %3158 = vmatprep.mubr.msk.bf16.mxu1 %vm3591_vm0, %v3590_v0 }
0x1004   :  { %3168 = vmatprep.subr.bf16.mxu1 %v3590_v0 }
0x10d5   :  { %v1544_v21 = vpop.f32.mrb[40].mxu1 }
0x10d6   :  { %v4060_v53 = vpack.c.bf16 %v1544_v21, %v1544_v21  ;;  %v3154_v54 = vpop.f32.mrb[41].mxu1 }
0x10d7   :  { %v1547_v55 = vpop.f32.mrb[42].mxu1 }
0x10d8   :  { %v4062_v56 = vpack.c.bf16 %v1547_v55, %v1547_v55  ;;  %v3155_v57 = vpop.f32.mrb[43].mxu1  ;;  %3159 = vmatmul.mubr.msk.bf16.vlgmr.msra.gmra.mrb[44].mxu1 %vm263_vm2, %v4060_v53 }
0x10d9   :  { %3170 = vmatprep.mubr.msk.bf16.mxu1 %vm3591_vm0, %v3590_v0 }
0x10da   :  { %3165 = vmatmul.mubr.msk.bf16.vlgmr.msra.gmra.mrb[44].mxu0 %vm263_vm2, %v4062_v56 }
0x10db   :  { %3176 = vmatprep.mubr.msk.bf16.mxu0 %vm3591_vm0, %v3590_v0 }
0x11ab   :  { %v1595_v58 = vpop.f32.mrb[44].mxu1 }
0x11ac   :  { %v1596_v59 = vadd.f32 %v1595_v58, %v3819_v30  ;;  %v3160_v60 = vpop.f32.mrb[45].mxu1 }
0x11ad   :  { %v1598_v61 = vpop.f32.mrb[46].mxu1  ;;  %v1643_v62 = vpop.f32.mrb[44].mxu0 }
0x11ae   :  { %v1644_v1 = vadd.f32 %v1643_v62, %v3821_v31  ;;  %v3161_v2 = vpop.f32.mrb[47].mxu1  ;;  %v3166_v3 = vpop.f32.mrb[45].mxu0  ;;  %v1649_v8 = vsel %vm263_vm2, %v1596_v59, -inf }
0x11af   :  { %v1646_v11 = vpop.f32.mrb[46].mxu0  ;;  %1650 = vmax.xlane.f32.xlu1 %v1649_v8 }
0x11b0   :  { %v3167_v12 = vpop.f32.mrb[47].mxu0  ;;  %v1652_v13 = vsel %vm263_vm2, %v1644_v1, -inf }
0x11b1   :  { %1653 = vmax.xlane.f32.xlu0 %v1652_v13 }
0x11c0   :  { %1673 = vrot.lane.b32.xlu1 %v3788_v10, %s3600_s21 }
0x123c   :  { %v1651_v16 = vpop.xlane.xlu1 %1650 }
0x123d   :  { %v1655_v17 = vsub.f32 %v1596_v59, %v1651_v16 }
0x123e   :  { %v1654_v9 = vpop.xlane.xlu0 %1653 }
0x123f   :  { %v1657_v15 = vmul.f32 1.442695, %v1655_v17  ;;  %v1656_v18 = vsub.f32 %v1644_v1, %v1654_v9 }
0x1240   :  { %v1674_v19 = vpop.permute.xlu1 %1673 }
0x1241   :  { %3399 = vpow2.f32 %v1657_v15  ;;  %v1659_v20 = vmul.f32 1.442695, %v1656_v18  ;;  %v1679_v23 = vsel %vm386_vm3, %v1674_v19, 0 }
0x1242   :  { %3169 = vmatpush3.bf16.msra.mxu1 %v1679_v23 }
0x1243   :  { %3401 = vpow2.f32 %v1659_v20  ;;  %3180 = vmatprep.subr.bf16.mxu1 %v3590_v0 }
0x124b   :  { %v3400_v24 = vpop.eup %3399 }
0x124c   :  { %v1661_v25 = vsel %vm263_vm2, %v3400_v24, 0.0 }
0x124d   :  { %v3402_v26 = vpop.eup %3401  ;;  %1662 = vadd.xlane.f32.xlu1 %v1661_v25 }
0x124e   :  { %v1664_v27 = vsel %vm263_vm2, %v3402_v26, 0.0 }
0x124f   :  { %1665 = vadd.xlane.f32.xlu0 %v1664_v27 }
0x125e   :  { %1772 = vrot.lane.b32.xlu1 %v3788_v10, %s3601_s27 }
0x1262   :  { %1823 = vrot.lane.b32.xlu1 %v3790_v14, %s3601_s27 }
0x1265   :  { %1721 = vrot.lane.b32.xlu0 %v3790_v14, %s3600_s21 }
0x1266   :  { %1770 = vrot.lane.b32.xlu1 %v4060_v53, %s3593_s17 }
0x1269   :  { %1821 = vrot.lane.b32.xlu0 %v4062_v56, %s3593_s17  ;;  %s3602_s17 = smov 48  }
0x12da   :  { %v1663_v28 = vpop.xlane.xlu1 %1662 }
0x12db   :  { %3403 = vrcp.f32 %v1663_v28 }
0x12dc   :  { %v1666_v29 = vpop.xlane.xlu0 %1665 }
0x12dd   :  { %3405 = vrcp.f32 %v1666_v29 }
0x12de   :  { %v1773_v34 = vpop.permute.xlu1 %1772 }
0x12df   :  { %v1778_v7 = vsel %vm263_vm2, %v1773_v34, 0 }
0x12e0   :  { %v1722_v32 = vpop.permute.xlu0 %1721 }
0x12e1   :  { %v1727_v33 = vsel %vm386_vm3, %v1722_v32, 0 }
0x12e2   :  { %3175 = vmatpush3.bf16.msra.mxu0 %v1727_v33  ;;  %v1824_v6 = vpop.permute.xlu1 %1823 }
0x12e3   :  { %3186 = vmatprep.subr.bf16.mxu0 %v3590_v0  ;;  %v1829_v38 = vsel %vm263_vm2, %v1824_v6, 0 }
0x12e4   :  { %v1822_v40 = vpop.permute.xlu0 %1821 }
0x12e5   :  { %v3404_v35 = vpop.eup %3403 }
0x12e6   :  { %v1669_v36 = vmul.f32 %v3404_v35, %v3400_v24  ;;  %v1771_v39 = vpop.permute.xlu1 %1770 }
0x12e7   :  { %v3406_v63 = vpop.eup %3405 }
0x12e8   :  { %v1670_v4 = vmul.f32 %v3406_v63, %v3402_v26  ;;  %v1671_v5 = vpack.c.bf16 %v1669_v36, %v1669_v36 }
0x12ea   :  { %3171 = vmatmul.mubr.msk.bf16.vlgmr.msra.gmra.mrb[48].mxu1 %vm263_vm2, %v1671_v5  ;;  %v1672_v37 = vpack.c.bf16 %v1670_v4, %v1670_v4 }
0x12eb   :  { %3181 = vmatpush3.bf16.xpose.msra.mxu1 %v1778_v7  ;;  %3182 = vmatprep.mubr.msk.bf16.mxu1 %vm3591_vm0, %v3590_v0 }
0x12ec   :  { %3177 = vmatmul.mubr.msk.bf16.vlgmr.msra.gmra.mrb[48].mxu0 %vm263_vm2, %v1672_v37  ;;  %3192 = vmatprep.subr.bf16.mxu1 %v3590_v0 }
0x12ed   :  { %3187 = vmatpush3.bf16.xpose.msra.mxu0 %v1829_v38  ;;  %3188 = vmatprep.mubr.msk.bf16.mxu0 %vm3591_vm0, %v3590_v0 }
0x12ee   :  { %3198 = vmatprep.subr.bf16.mxu0 %v3590_v0 }
0x12f2   :  { %3183 = vmatmul.mubr.msk.bf16.vlgmr.msra.gmra.mrb[52].mxu1 %vm263_vm2, %v1771_v39 }
0x12f3   :  { %3194 = vmatprep.mubr.msk.bf16.mxu1 %vm3591_vm0, %v3590_v0 }
0x12f4   :  { %3189 = vmatmul.mubr.msk.bf16.vlgmr.msra.gmra.mrb[52].mxu0 %vm263_vm2, %v1822_v40 }
0x12f5   :  { %3200 = vmatprep.mubr.msk.bf16.mxu0 %vm3591_vm0, %v3590_v0 }
0x13bd   :  { %v4106_v41 = vpop.f32.mrb[48].mxu1 }
0x13be   :  { %v3172_v22 = vpop.f32.mrb[49].mxu1 }
0x13bf   :  { %v1718_v42 = vpop.f32.mrb[50].mxu1  ;;  %v4108_v43 = vpop.f32.mrb[48].mxu0 }
0x13c0   :  { %v3173_v44 = vpop.f32.mrb[51].mxu1  ;;  %v3178_v45 = vpop.f32.mrb[49].mxu0 }
0x13c1   :  { %v1766_v46 = vpop.f32.mrb[50].mxu0 }
0x13c2   :  { %v3179_v47 = vpop.f32.mrb[51].mxu0 }
0x13c5   :  { %v1814_v50 = vpop.f32.mrb[52].mxu1 }
0x13c6   :  { %v1815_v51 = vadd.f32 %v1814_v50, %v3819_v30  ;;  %v3184_v52 = vpop.f32.mrb[53].mxu1 }
0x13c7   :  { %v1817_v21 = vpop.f32.mrb[54].mxu1  ;;  %v1865_v54 = vpop.f32.mrb[52].mxu0 }
0x13c8   :  { %v1866_v55 = vadd.f32 %v1865_v54, %v3821_v31  ;;  %v3185_v57 = vpop.f32.mrb[55].mxu1  ;;  %v3190_v58 = vpop.f32.mrb[53].mxu0  ;;  %v1871_v59 = vsel %vm263_vm2, %v1815_v51, -inf }
0x13c9   :  { %v1868_v60 = vpop.f32.mrb[54].mxu0  ;;  %1872 = vmax.xlane.f32.xlu1 %v1871_v59 }
0x13ca   :  { %v3191_v61 = vpop.f32.mrb[55].mxu0  ;;  %v1874_v62 = vsel %vm263_vm2, %v1866_v55, -inf }
0x13cb   :  { %1875 = vmax.xlane.f32.xlu0 %v1874_v62 }
0x13da   :  { %1895 = vrot.lane.b32.xlu1 %v3788_v10, %s3599_s10 }
0x13de   :  { %1993 = vrot.lane.b32.xlu1 %v3788_v10, %s3602_s17 }
0x13e2   :  { %2043 = vrot.lane.b32.xlu1 %v3790_v14, %s3602_s17 }
0x13e6   :  { %1991 = vrot.lane.b32.xlu1 %v4060_v53, %s3595_s22 }
0x1456   :  { %v1873_v1 = vpop.xlane.xlu1 %1872 }
0x1457   :  { %v1877_v2 = vsub.f32 %v1815_v51, %v1873_v1 }
0x1458   :  { %v1876_v3 = vpop.xlane.xlu0 %1875 }
0x1459   :  { %v1879_v8 = vmul.f32 1.442695, %v1877_v2  ;;  %v1878_v11 = vsub.f32 %v1866_v55, %v1876_v3 }
0x145a   :  { %v1896_v12 = vpop.permute.xlu1 %1895 }
0x145b   :  { %3407 = vpow2.f32 %v1879_v8  ;;  %v1881_v13 = vmul.f32 1.442695, %v1878_v11  ;;  %v1901_v16 = vsel %vm386_vm3, %v1896_v12, 0 }
0x145c   :  { %3193 = vmatpush3.bf16.msra.mxu1 %v1901_v16 }
0x145d   :  { %3409 = vpow2.f32 %v1881_v13  ;;  %3204 = vmatprep.subr.bf16.mxu1 %v3590_v0 }
0x145e   :  { %v1994_v26 = vpop.permute.xlu1 %1993 }
0x145f   :  { %v1999_v32 = vsel %vm263_vm2, %v1994_v26, 0 }
0x1462   :  { %v2044_v34 = vpop.permute.xlu1 %2043 }
0x1463   :  { %v2049_v36 = vsel %vm263_vm2, %v2044_v34, 0 }
0x1465   :  { %v3408_v17 = vpop.eup %3407 }
0x1466   :  { %v1883_v9 = vsel %vm263_vm2, %v3408_v17, 0.0  ;;  %v1992_v63 = vpop.permute.xlu1 %1991 }
0x1467   :  { %v3410_v15 = vpop.eup %3409  ;;  %1884 = vadd.xlane.f32.xlu0 %v1883_v9 }
0x1468   :  { %v1886_v18 = vsel %vm263_vm2, %v3410_v15, 0.0 }
0x146b   :  { %1887 = vadd.xlane.f32.xlu0 %v1886_v18 }
0x1481   :  { %1943 = vrot.lane.b32.xlu0 %v3790_v14, %s3599_s10 }
0x1485   :  { %2041 = vrot.lane.b32.xlu0 %v4062_v56, %s3595_s22  ;;  %s3603_s22 = smov 40  }
0x14f4   :  { %v1885_v19 = vpop.xlane.xlu0 %1884 }
0x14f5   :  { %3411 = vrcp.f32 %v1885_v19 }
0x14f8   :  { %v1888_v20 = vpop.xlane.xlu0 %1887 }
0x14f9   :  { %3413 = vrcp.f32 %v1888_v20 }
0x14fc   :  { %v1944_v23 = vpop.permute.xlu0 %1943 }
0x14fd   :  { %v1949_v24 = vsel %vm386_vm3, %v1944_v23, 0 }
0x14fe   :  { %3199 = vmatpush3.bf16.msra.mxu0 %v1949_v24 }
0x14ff   :  { %v3412_v25 = vpop.eup %3411  ;;  %3210 = vmatprep.subr.bf16.mxu0 %v3590_v0 }
0x1500   :  { %v1891_v27 = vmul.f32 %v3412_v25, %v3408_v17  ;;  %v2042_v4 = vpop.permute.xlu0 %2041 }
0x1502   :  { %v1893_v28 = vpack.c.bf16 %v1891_v27, %v1891_v27 }
0x1503   :  { %v3414_v29 = vpop.eup %3413 }
0x1504   :  { %v1892_v33 = vmul.f32 %v3414_v29, %v3410_v15  ;;  %3195 = vmatmul.mubr.msk.bf16.vlgmr.msra.gmra.mrb[56].mxu1 %vm263_vm2, %v1893_v28 }
0x1505   :  { %3205 = vmatpush3.bf16.xpose.msra.mxu1 %v1999_v32  ;;  %3206 = vmatprep.mubr.msk.bf16.mxu1 %vm3591_vm0, %v3590_v0 }
0x1506   :  { %v1894_v35 = vpack.c.bf16 %v1892_v33, %v1892_v33  ;;  %3216 = vmatprep.subr.bf16.mxu1 %v3590_v0 }
0x1508   :  { %3201 = vmatmul.mubr.msk.bf16.vlgmr.msra.gmra.mrb[56].mxu0 %vm263_vm2, %v1894_v35 }
0x1509   :  { %3211 = vmatpush3.bf16.xpose.msra.mxu0 %v2049_v36  ;;  %3212 = vmatprep.mubr.msk.bf16.mxu0 %vm3591_vm0, %v3590_v0 }
0x150a   :  { %3222 = vmatprep.subr.bf16.mxu0 %v3590_v0 }
0x150c   :  { %3207 = vmatmul.mubr.msk.bf16.vlgmr.msra.gmra.mrb[60].mxu1 %vm263_vm2, %v1992_v63 }
0x150d   :  { %3218 = vmatprep.mubr.msk.bf16.mxu1 %vm3591_vm0, %v3590_v0 }
0x1510   :  { %3213 = vmatmul.mubr.msk.bf16.vlgmr.msra.gmra.mrb[60].mxu0 %vm263_vm2, %v2042_v4 }
0x1511   :  { %3224 = vmatprep.mubr.msk.bf16.mxu0 %vm3591_vm0, %v3590_v0 }
0x15d7   :  { %v4146_v5 = vpop.f32.mrb[56].mxu1 }
0x15d8   :  { %v3196_v6 = vpop.f32.mrb[57].mxu1 }
0x15d9   :  { %v1940_v7 = vpop.f32.mrb[58].mxu1 }
0x15da   :  { %v3197_v37 = vpop.f32.mrb[59].mxu1 }
0x15db   :  { %v4148_v38 = vpop.f32.mrb[56].mxu0 }
0x15dc   :  { %v3321_v39 = vpack.i.bf16 %v4148_v38, %v4146_v5  ;;  %v3202_v40 = vpop.f32.mrb[57].mxu0 }
0x15dd   :  { %v1988_v22 = vpop.f32.mrb[58].mxu0 }
0x15de   :  { %v3203_v42 = vpop.f32.mrb[59].mxu0 }
0x15df   :  { %v2035_v44 = vpop.f32.mrb[60].mxu1 }
0x15e0   :  { %v2036_v45 = vadd.f32 %v2035_v44, %v3819_v30  ;;  %v3208_v46 = vpop.f32.mrb[61].mxu1 }
0x15e1   :  { %v2038_v47 = vpop.f32.mrb[62].mxu1 }
0x15e2   :  { %v3209_v50 = vpop.f32.mrb[63].mxu1  ;;  %v2091_v51 = vsel %vm263_vm2, %v2036_v45, -inf }
0x15e3   :  { %v2085_v52 = vpop.f32.mrb[60].mxu0  ;;  %2092 = vmax.xlane.f32.xlu1 %v2091_v51 }
0x15e4   :  { %v2086_v21 = vadd.f32 %v2085_v52, %v3821_v31  ;;  %v3214_v54 = vpop.f32.mrb[61].mxu0 }
0x15e5   :  { %v2088_v55 = vpop.f32.mrb[62].mxu0 }
0x15e6   :  { %v3215_v57 = vpop.f32.mrb[63].mxu0  ;;  %v2094_v58 = vsel %vm263_vm2, %v2086_v21, -inf }
0x15e7   :  { %2095 = vmax.xlane.f32.xlu0 %v2094_v58 }
0x15f4   :  { %2115 = vrot.lane.b32.xlu1 %v3788_v10, %s4322_s29 }
0x15f8   :  { %2213 = vrot.lane.b32.xlu1 %v3788_v10, %s3603_s22 }
0x15fc   :  { %2263 = vrot.lane.b32.xlu1 %v3790_v14, %s3603_s22 }
0x1600   :  { %2211 = vrot.lane.b32.xlu1 %v4060_v53, %s3597_s25 }
0x1670   :  { %v2093_v59 = vpop.xlane.xlu1 %2092 }
0x1671   :  { %v2097_v60 = vsub.f32 %v2036_v45, %v2093_v59 }
0x1673   :  { %v2099_v61 = vmul.f32 1.442695, %v2097_v60 }
0x1674   :  { %v2096_v62 = vpop.xlane.xlu0 %2095  ;;  %v2116_v1 = vpop.permute.xlu1 %2115 }
0x1675   :  { %3415 = vpow2.f32 %v2099_v61  ;;  %v2098_v2 = vsub.f32 %v2086_v21, %v2096_v62  ;;  %v2121_v3 = vsel %vm386_vm3, %v2116_v1, 0 }
0x1676   :  { %3217 = vmatpush3.bf16.msra.mxu1 %v2121_v3 }
0x1677   :  { %v2101_v8 = vmul.f32 1.442695, %v2098_v2  ;;  %3228 = vmatprep.subr.bf16.mxu1 %v3590_v0 }
0x1678   :  { %v2214_v19 = vpop.permute.xlu1 %2213 }
0x1679   :  { %3417 = vpow2.f32 %v2101_v8  ;;  %v2219_v25 = vsel %vm263_vm2, %v2214_v19, 0 }
0x167f   :  { %v3416_v11 = vpop.eup %3415 }
0x1680   :  { %v2103_v12 = vsel %vm263_vm2, %v3416_v11, 0.0 }
0x1681   :  { %2104 = vadd.xlane.f32.xlu0 %v2103_v12 }
0x1683   :  { %v3418_v13 = vpop.eup %3417 }
0x1684   :  { %v2106_v53 = vsel %vm263_vm2, %v3418_v13, 0.0 }
0x1685   :  { %2107 = vadd.xlane.f32.xlu0 %v2106_v53 }
0x169b   :  { %2163 = vrot.lane.b32.xlu0 %v3790_v14, %s4322_s29 }
0x169f   :  { %2261 = vrot.lane.b32.xlu0 %v4062_v56, %s3597_s25  ;;  %v2264_v56 = vpop.permute.xlu1 %2263 }
0x16a0   :  { %v2269_v28 = vsel %vm263_vm2, %v2264_v56, 0 }
0x16a3   :  { %v2212_v29 = vpop.permute.xlu1 %2211 }
0x170e   :  { %v2105_v16 = vpop.xlane.xlu0 %2104 }
0x170f   :  { %3419 = vrcp.f32 %v2105_v16  ;;  %v3351_v16 = vld [vmem:[%s4304_s5 + $0x10] sm:$0xff]  }
0x1712   :  { %v2108_v17 = vpop.xlane.xlu0 %2107 }
0x1713   :  { %3421 = vrcp.f32 %v2108_v17  ;;  %v3352_v17 = vld [vmem:[%s4304_s5 + $0x18] sm:$0xff]  }
0x1716   :  { %v2164_v9 = vpop.permute.xlu0 %2163 }
0x1717   :  { %v2169_v15 = vsel %vm386_vm3, %v2164_v9, 0 }
0x1718   :  { %3223 = vmatpush3.bf16.msra.mxu0 %v2169_v15 }
0x1719   :  { %v3420_v18 = vpop.eup %3419  ;;  %3234 = vmatprep.subr.bf16.mxu0 %v3590_v0 }
0x171a   :  { %v2111_v20 = vmul.f32 %v3420_v18, %v3416_v11  ;;  %v2262_v32 = vpop.permute.xlu0 %2261 }
0x171c   :  { %v2113_v23 = vpack.c.bf16 %v2111_v20, %v2111_v20 }
0x171d   :  { %v3422_v24 = vpop.eup %3421 }
0x171e   :  { %v2112_v26 = vmul.f32 %v3422_v24, %v3418_v13  ;;  %3219 = vmatmul.mubr.msk.bf16.vlgmr.msra.gmra.mrb[64].mxu1 %vm263_vm2, %v2113_v23 }
0x171f   :  { %3229 = vmatpush3.bf16.xpose.msra.mxu1 %v2219_v25  ;;  %3230 = vmatprep.mubr.msk.bf16.mxu1 %vm3591_vm0, %v3590_v0 }
0x1720   :  { %v2114_v27 = vpack.c.bf16 %v2112_v26, %v2112_v26  ;;  %3240 = vmatprep.subr.bf16.mxu1 %v3590_v0 }
0x1722   :  { %3225 = vmatmul.mubr.msk.bf16.vlgmr.msra.gmra.mrb[64].mxu0 %vm263_vm2, %v2114_v27 }
0x1723   :  { %3235 = vmatpush3.bf16.xpose.msra.mxu0 %v2269_v28  ;;  %3236 = vmatprep.mubr.msk.bf16.mxu0 %vm3591_vm0, %v3590_v0 }
0x1724   :  { %3246 = vmatprep.subr.bf16.mxu0 %v3590_v0 }
0x1726   :  { %3231 = vmatmul.mubr.msk.bf16.vlgmr.msra.gmra.mrb[68].mxu1 %vm263_vm2, %v2212_v29 }
0x1727   :  { %3242 = vmatprep.mubr.msk.bf16.mxu1 %vm3591_vm0, %v3590_v0 }
0x172a   :  { %3237 = vmatmul.mubr.msk.bf16.vlgmr.msra.gmra.mrb[68].mxu0 %vm263_vm2, %v2262_v32 }
0x172b   :  { %3248 = vmatprep.mubr.msk.bf16.mxu0 %vm3591_vm0, %v3590_v0 }
0x17f1   :  { %v2157_v33 = vpop.f32.mrb[64].mxu1 }
0x17f2   :  { %v3220_v34 = vpop.f32.mrb[65].mxu1 }
0x17f3   :  { %v2160_v35 = vpop.f32.mrb[66].mxu1 }
0x17f4   :  { %v3221_v36 = vpop.f32.mrb[67].mxu1 }
0x17f5   :  { %v2205_v63 = vpop.f32.mrb[64].mxu0 }
0x17f6   :  { %v3326_v4 = vpack.i.bf16 %v2205_v63, %v2157_v33  ;;  %v3226_v6 = vpop.f32.mrb[65].mxu0 }
0x17f7   :  { %v2208_v7 = vpop.f32.mrb[66].mxu0 }
0x17f8   :  { %v3227_v37 = vpop.f32.mrb[67].mxu0 }
0x17f9   :  { %v2255_v40 = vpop.f32.mrb[68].mxu1 }
0x17fa   :  { %v2256_v22 = vadd.f32 %v2255_v40, %v3819_v30  ;;  %v3232_v42 = vpop.f32.mrb[69].mxu1 }
0x17fb   :  { %v2258_v44 = vpop.f32.mrb[70].mxu1 }
0x17fc   :  { %v3233_v45 = vpop.f32.mrb[71].mxu1  ;;  %v2311_v46 = vsel %vm263_vm2, %v2256_v22, -inf }
0x17fd   :  { %v2305_v47 = vpop.f32.mrb[68].mxu0  ;;  %2312 = vmax.xlane.f32.xlu1 %v2311_v46 }
0x17fe   :  { %v2306_v50 = vadd.f32 %v2305_v47, %v3821_v31  ;;  %v3238_v51 = vpop.f32.mrb[69].mxu0 }
0x17ff   :  { %v2308_v52 = vpop.f32.mrb[70].mxu0 }
0x1800   :  { %v3239_v21 = vpop.f32.mrb[71].mxu0  ;;  %v2314_v54 = vsel %vm263_vm2, %v2306_v50, -inf }
0x1801   :  { %2315 = vmax.xlane.f32.xlu0 %v2314_v54 }
0x180e   :  { %2335 = vrot.lane.b32.xlu1 %v3788_v10, %s3587_s18 }
0x1812   :  { %3322 = vrot.lane.b32.xlu1 %v3321_v39, %s3587_s18 }
0x1816   :  { %3327 = vrot.lane.b32.xlu1 %v3326_v4, %s4322_s29  ;;  %s3604_s29 = smov [#allocation11]  }
0x1817   :  { %s2792_s25 = sshll.u32 %s3604_s29, 4  ;;  %s2793_s25 = int_to_ptr.vmem [resolvable:$true] %s2792_s25 }
0x1818   :  { %s3549_s23 = scalar_lea.vmem %s2793_s25, 256  ;;  %p3554_p13 = scmp.lt.s32.totalorder %s2793_s25, %s2793_s25 }
0x1819   :  { %p3550_p12 = scmp.ne.s32.totalorder %s2793_s25, %s3549_s23  ;;  %p3555_p0 = scmp.lt.s32.totalorder %s3549_s23, %s3549_s23 }
0x181b   :  { %p3556_p1 = por %p3555_p0, %p3554_p13 }
0x181d   :  { %p3557_p2 = pnand %p3556_p1, %p3550_p12 }
0x188a   :  { %v2313_v30 = vpop.xlane.xlu1 %2312 }
0x188b   :  { %v2317_v55 = vsub.f32 %v2256_v22, %v2313_v30 }
0x188d   :  { %v2319_v57 = vmul.f32 1.442695, %v2317_v55 }
0x188e   :  { %v2316_v31 = vpop.xlane.xlu0 %2315  ;;  %v2336_v58 = vpop.permute.xlu1 %2335 }
0x188f   :  { %3423 = vpow2.f32 %v2319_v57  ;;  %v2318_v59 = vsub.f32 %v2306_v50, %v2316_v31  ;;  %v2341_v60 = vsel %vm386_vm3, %v2336_v58, 0 }
0x1890   :  { %3241 = vmatpush3.bf16.msra.mxu1 %v2341_v60 }
0x1891   :  { %v2321_v61 = vmul.f32 1.442695, %v2318_v59  ;;  %3252 = vmatprep.subr.bf16.mxu1 %v3590_v0 }
0x1892   :  { %v3323_v56 = vpop.permute.xlu1 %3322 }
0x1893   :  { %3425 = vpow2.f32 %v2321_v61  ;;  %v3325_v28 = vunpack.i.h.bf16 %v3323_v56  ;;  %v3324_v29 = vunpack.i.l.bf16 %v3323_v56 }
0x1895   :  { %v2456_v35 = vsel %vm263_vm2, %v4108_v43, %v3325_v28  ;;  %v2455_v36 = vsel %vm263_vm2, %v4106_v41, %v3324_v29  ;;  %v2875_v41 = vld [vmem:[%s4305_s6 + $0x1] ss:$0 sm:$0xff] }
0x1896   :  { %v3328_v27 = vpop.permute.xlu1 %3327 }
0x1897   :  { %v3330_v32 = vunpack.i.h.bf16 %v3328_v27  ;;  %v3329_v33 = vunpack.i.l.bf16 %v3328_v27 }
0x1899   :  { %v3424_v10 = vpop.eup %3423  ;;  %v2457_v6 = vsel %vm1167_vm4, %v2455_v36, %v3329_v33  ;;  %v2458_v7 = vsel %vm1167_vm4, %v2456_v35, %v3330_v32 }
0x189a   :  { %v2323_v5 = vsel %vm263_vm2, %v3424_v10, 0.0 }
0x189b   :  { %2324 = vadd.xlane.f32.xlu0 %v2323_v5  ;;  %v3355_v5 = vld [vmem:[%s4310_s11 + $0x20] sm:$0xff]  }
0x189d   :  { %v3426_v38 = vpop.eup %3425 }
0x189e   :  { %v2326_v39 = vsel %vm263_vm2, %v3426_v38, 0.0 }
0x189f   :  { %2327 = vadd.xlane.f32.xlu0 %v2326_v39 }
0x18b5   :  { %2383 = vrot.lane.b32.xlu0 %v3790_v14, %s3587_s18 }
0x1928   :  { %v2325_v62 = vpop.xlane.xlu0 %2324 }
0x1929   :  { %3427 = vrcp.f32 %v2325_v62 }
0x192c   :  { %v2328_v1 = vpop.xlane.xlu0 %2327 }
0x192d   :  { %3429 = vrcp.f32 %v2328_v1 }
0x1930   :  { %v2384_v2 = vpop.permute.xlu0 %2383 }
0x1931   :  { %v2389_v3 = vsel %vm386_vm3, %v2384_v2, 0 }
0x1932   :  { %3247 = vmatpush3.bf16.msra.mxu0 %v2389_v3 }
0x1933   :  { %v3428_v8 = vpop.eup %3427  ;;  %3260 = vmatprep.subr.bf16.mxu0 %v3590_v0 }
0x1934   :  { %v2331_v11 = vmul.f32 %v3428_v8, %v3424_v10  ;;  %v3354_v10 = vld [vmem:[%s4308_s9 + $0x18] sm:$0xff]  }
0x1936   :  { %v2333_v12 = vpack.c.bf16 %v2331_v11, %v2331_v11 }
0x1937   :  { %v3430_v13 = vpop.eup %3429 }
0x1938   :  { %v2332_v53 = vmul.f32 %v3430_v13, %v3426_v38  ;;  %3243 = vmatmul.mubr.msk.bf16.vlgmr.msra.gmra.mrb[72].mxu1 %vm263_vm2, %v2333_v12  ;;  %v3356_v38 = vld [vmem:[%s4310_s11 + $0x28] sm:$0xff]   ;;  %v2880_v13 = vld [vmem:[%s4306_s7 + $0x1] ss:$0 sm:$0xff] }
0x1939   :  { %3256 = vmatprep.mubr.msk.bf16.mxu1 %vm3591_vm0, %v3590_v0  ;;  %3253 = vmatpush3.bf16.msra.mxu1 %v3351_v16 }
0x193a   :  { %v2334_v14 = vpack.c.bf16 %v2332_v53, %v2332_v53  ;;  %3254 = vmatprep.subr.bf16.mxu1 %v3590_v0 }
0x193c   :  { %3249 = vmatmul.mubr.msk.bf16.vlgmr.msra.gmra.mrb[72].mxu0 %vm263_vm2, %v2334_v14 }
0x193d   :  { %3264 = vmatprep.mubr.msk.bf16.mxu0 %vm3591_vm0, %v3590_v0  ;;  %3255 = vmatpush3.bf16.msra.mxu1 %v3352_v17  ;;  %v2881_v17 = vld [vmem:[#allocation8 + $0x1] ss:$0 sm:$0xff] }
0x193e   :  { %3268 = vmatprep.subr.bf16.mxu1 %v3590_v0 }
0x1a0b   :  { %v2377_v9 = vpop.f32.mrb[72].mxu1 }
0x1a0c   :  { %v3244_v15 = vpop.f32.mrb[73].mxu1 }
0x1a0d   :  { %v2380_v18 = vpop.f32.mrb[74].mxu1 }
0x1a0e   :  { %v3245_v19 = vpop.f32.mrb[75].mxu1 }
0x1a0f   :  { %v2425_v20 = vpop.f32.mrb[72].mxu0 }
0x1a10   :  { %v3331_v23 = vpack.i.bf16 %v2425_v20, %v2377_v9  ;;  %v3250_v24 = vpop.f32.mrb[73].mxu0  ;;  %v3357_v20 = vld [vmem:[%s4310_s11 + $0x30] sm:$0xff]  }
0x1a11   :  { %v2428_v25 = vpop.f32.mrb[74].mxu0  ;;  %v2886_v24 = vld [vmem:[#allocation10 + $0x1] ss:$0 sm:$0xff] }
0x1a12   :  { %v3251_v26 = vpop.f32.mrb[75].mxu0  ;;  %3332 = vrot.lane.b32.xlu1 %v3331_v23, %s3599_s10  ;;  %v3358_v23 = vld [vmem:[%s4310_s11 + $0x38] sm:$0xff]  }
0x1a84   :  { %v3333_v34 = vpop.permute.xlu1 %3332 }
0x1a85   :  { %v3335_v63 = vunpack.i.h.bf16 %v3333_v34  ;;  %v3334_v4 = vunpack.i.l.bf16 %v3333_v34 }
0x1a87   :  { %v2460_v37 = vsel %vm1170_vm5, %v2458_v7, %v3335_v63  ;;  %v2459_v40 = vsel %vm1170_vm5, %v2457_v6, %v3334_v4 }
0x1a88   :  { %v2461_v22 = vpack.c.bf16 %v2460_v37, %v2459_v40 }
0x1a8a   :  { %3257 = vmatmul.mubr.msk.bf16.vlgmr.msra.gmra.mrb[76].mxu1 %vm153_vm1, %v2461_v22 }
0x1a8b   :  { %3276 = vmatprep.mubr.msk.bf16.mxu1 %vm3591_vm0, %v3590_v0  ;;  %3269 = vmatpush3.bf16.msra.mxu1 %v3355_v5 }
0x1a8c   :  { %3270 = vmatprep.subr.bf16.mxu1 %v3590_v0 }
0x1a8f   :  { %3271 = vmatpush3.bf16.msra.mxu1 %v3356_v38 }
0x1a90   :  { %3272 = vmatprep.subr.bf16.mxu1 %v3590_v0 }
0x1a93   :  { %3273 = vmatpush3.bf16.msra.mxu1 %v3357_v20 }
0x1a94   :  { %3274 = vmatprep.subr.bf16.mxu1 %v3590_v0 }
0x1a97   :  { %3275 = vmatpush3.bf16.msra.mxu1 %v3358_v23 }
0x1b5d   :  { %v2524_v43 = vpop.f32.mrb[76].mxu1 }
0x1b5e   :  { %v2525_v42 = vadd.f32 %v2875_v41, %v2524_v43  ;;  %v3258_v44 = vpop.f32.mrb[77].mxu1 }
0x1b5f   :  { %v2527_v45 = vpop.f32.mrb[78].mxu1 }
0x1b60   :  { %v2528_v46 = vadd.f32 %v2875_v41, %v2527_v45  ;;  %v3259_v47 = vpop.f32.mrb[79].mxu1  ;;  %v2531_v50 = vadd.f32 %v2525_v42, %v4049_v48 }
0x1b62   :  { %v2537_v51 = vsel %vm153_vm1, %v2531_v50, 0.0  ;;  %v2532_v52 = vadd.f32 %v2528_v46, %v4051_v49  ;;  %v3353_v49 = vld [vmem:[%s4308_s9 + $0x10] sm:$0xff]  }
0x1b63   :  { %2538 = vadd.xlane.f32.xlu0 %v2537_v51  ;;  %3261 = vmatpush3.bf16.msra.mxu0 %v3353_v49  ;;  %v2908_v49 = vld [vmem:[%s4313_s14 + $0x1] ss:$0 sm:$0xff] }
0x1b64   :  { %v2540_v21 = vsel %vm153_vm1, %v2532_v52, 0.0  ;;  %3262 = vmatprep.subr.bf16.mxu0 %v3590_v0  ;;  %v2899_v0 = vld [vmem:[%s4311_s12 + $0x1] ss:$0 sm:$0xff] }
0x1b65   :  { %2541 = vadd.xlane.f32.xlu1 %v2540_v21 }
0x1b67   :  { %3263 = vmatpush3.bf16.msra.mxu0 %v3354_v10 }
0x1bf0   :  { %v2539_v54 = vpop.xlane.xlu0 %2538 }
0x1bf1   :  { %v2543_v30 = vmul.f32 0.03125, %v2539_v54 }
0x1bf2   :  { %v2542_v55 = vpop.xlane.xlu1 %2541 }
0x1bf3   :  { %v2545_v57 = vsub.f32 %v2531_v50, %v2543_v30  ;;  %v2544_v31 = vmul.f32 0.03125, %v2542_v55 }
0x1bf5   :  { %v2546_v58 = vsub.f32 %v2532_v52, %v2544_v31  ;;  %v2547_v59 = vmul.f32 %v2545_v57, %v2545_v57 }
0x1bf7   :  { %v2549_v60 = vsel %vm153_vm1, %v2547_v59, 0.0  ;;  %v2548_v61 = vmul.f32 %v2546_v58, %v2546_v58 }
0x1bf8   :  { %2550 = vadd.xlane.f32.xlu0 %v2549_v60  ;;  %v2907_v60 = vld [vmem:[%s4312_s13 + $0x1] ss:$0 sm:$0xff] }
0x1bf9   :  { %v2552_v48 = vsel %vm153_vm1, %v2548_v61, 0.0 }
0x1bfc   :  { %2553 = vadd.xlane.f32.xlu0 %v2552_v48 }
0x1c85   :  { %v2551_v39 = vpop.xlane.xlu0 %2550 }
0x1c86   :  { %v2555_v62 = vmul.f32 0.03125, %v2551_v39 }
0x1c88   :  { %v2557_v1 = vadd.f32 1e-05, %v2555_v62 }
0x1c89   :  { %v2554_v2 = vpop.xlane.xlu0 %2553 }
0x1c8a   :  { %3431 = vrsqrt.f32 %v2557_v1  ;;  %v2556_v3 = vmul.f32 0.03125, %v2554_v2 }
0x1c8c   :  { %v2558_v8 = vadd.f32 1e-05, %v2556_v3 }
0x1c8e   :  { %3433 = vrsqrt.f32 %v2558_v8 }
0x1c94   :  { %v3432_v11 = vpop.eup %3431 }
0x1c95   :  { %v2561_v12 = vmul.f32 %v3432_v11, %v2545_v57 }
0x1c97   :  { %v2569_v14 = vmul.f32 %v2880_v13, %v2561_v12 }
0x1c98   :  { %v3434_v53 = vpop.eup %3433 }
0x1c99   :  { %v2562_v16 = vmul.f32 %v3434_v53, %v2546_v58  ;;  %v2577_v15 = vadd.f32 %v2881_v17, %v2569_v14 }
0x1c9b   :  { %v2570_v9 = vmul.f32 %v2880_v13, %v2562_v16 }
0x1c9d   :  { %v2578_v18 = vadd.f32 %v2881_v17, %v2570_v9 }
0x1c9f   :  { %v2579_v19 = vpack.c.bf16 %v2578_v18, %v2577_v15 }
0x1ca1   :  { %3265 = vmatmul.mubr.msk.bf16.vlgmr.msra.gmra.mrb[76].mxu0 %vm153_vm1, %v2579_v19 }
0x1d74   :  { %v2642_v25 = vpop.f32.mrb[76].mxu0 }
0x1d75   :  { %v2643_v26 = vadd.f32 %v2886_v24, %v2642_v25  ;;  %v3266_v56 = vpop.f32.mrb[77].mxu0 }
0x1d76   :  { %v2645_v27 = vpop.f32.mrb[78].mxu0 }
0x1d77   :  { %v2646_v28 = vadd.f32 %v2886_v24, %v2645_v27  ;;  %v3267_v29 = vpop.f32.mrb[79].mxu0  ;;  %v2649_v32 = vmax.f32 %v2643_v26, 0.0 }
0x1d79   :  { %v2650_v33 = vmax.f32 %v2646_v28, 0.0 }
0x1d7b   :  { %v2651_v34 = vpack.c.bf16 %v2650_v33, %v2649_v32 }
0x1d7d   :  { %3277 = vmatmul.mubr.msk.bf16.vlgmr.msra.gmra.mrb[80].mxu1 %vm1398_vm6, %v2651_v34 }
0x1e50   :  { %v2730_v35 = vpop.f32.mrb[80].mxu1 }
0x1e51   :  { %v2731_v36 = vadd.f32 %v2899_v0, %v2730_v35  ;;  %v3278_v63 = vpop.f32.mrb[81].mxu1 }
0x1e52   :  { %v2733_v4 = vpop.f32.mrb[82].mxu1 }
0x1e53   :  { %v2734_v6 = vadd.f32 %v2899_v0, %v2733_v4  ;;  %v3279_v7 = vpop.f32.mrb[83].mxu1  ;;  %v2737_v37 = vadd.f32 %v2731_v36, %v2577_v15 }
0x1e55   :  { %v2743_v40 = vsel %vm153_vm1, %v2737_v37, 0.0  ;;  %v2738_v22 = vadd.f32 %v2734_v6, %v2578_v18 }
0x1e56   :  { %2744 = vadd.xlane.f32.xlu0 %v2743_v40 }
0x1e57   :  { %v2746_v41 = vsel %vm153_vm1, %v2738_v22, 0.0 }
0x1e58   :  { %2747 = vadd.xlane.f32.xlu1 %v2746_v41 }
0x1ee3   :  { %v2745_v43 = vpop.xlane.xlu0 %2744 }
0x1ee4   :  { %v2749_v42 = vmul.f32 0.03125, %v2745_v43 }
0x1ee5   :  { %v2748_v44 = vpop.xlane.xlu1 %2747 }
0x1ee6   :  { %v2751_v45 = vsub.f32 %v2737_v37, %v2749_v42  ;;  %v2750_v46 = vmul.f32 0.03125, %v2748_v44 }
0x1ee8   :  { %v2752_v47 = vsub.f32 %v2738_v22, %v2750_v46  ;;  %v2753_v50 = vmul.f32 %v2751_v45, %v2751_v45 }
0x1eea   :  { %v2755_v51 = vsel %vm153_vm1, %v2753_v50, 0.0  ;;  %v2754_v52 = vmul.f32 %v2752_v47, %v2752_v47 }
0x1eeb   :  { %2756 = vadd.xlane.f32.xlu0 %v2755_v51 }
0x1eec   :  { %v2758_v21 = vsel %vm153_vm1, %v2754_v52, 0.0 }
0x1eed   :  { %2759 = vadd.xlane.f32.xlu1 %v2758_v21 }
0x1f78   :  { %v2757_v54 = vpop.xlane.xlu0 %2756 }
0x1f79   :  { %v2761_v30 = vmul.f32 0.03125, %v2757_v54 }
0x1f7a   :  { %v2760_v55 = vpop.xlane.xlu1 %2759 }
0x1f7b   :  { %v2763_v57 = vadd.f32 1e-05, %v2761_v30  ;;  %v2762_v31 = vmul.f32 0.03125, %v2760_v55 }
0x1f7d   :  { %3435 = vrsqrt.f32 %v2763_v57  ;;  %v2764_v58 = vadd.f32 1e-05, %v2762_v31 }
0x1f7f   :  { %3437 = vrsqrt.f32 %v2764_v58 }
0x1f87   :  { %v3436_v59 = vpop.eup %3435 }
0x1f88   :  { %v2767_v61 = vmul.f32 %v3436_v59, %v2751_v45 }
0x1f89   :  { %v3438_v48 = vpop.eup %3437 }
0x1f8a   :  { %v2768_v10 = vmul.f32 %v3438_v48, %v2752_v47  ;;  %v2775_v5 = vmul.f32 %v2907_v60, %v2767_v61 }
0x1f8c   :  { %v2776_v38 = vmul.f32 %v2907_v60, %v2768_v10  ;;  %v2783_v39 = vadd.f32 %v2908_v49, %v2775_v5 }
0x1f8e   :  { %v2784_v62 = vadd.f32 %v2908_v49, %v2776_v38  ;;  %2785 = vst.msk [vmem:[#allocation11] sm:$0xff] %vm153_vm1, %v2783_v39 }
0x1f90   :  { %2786 = vst.msk [vmem:[#allocation11 + $0x8] sm:$0xff] %vm153_vm1, %v2784_v62 }
0x1f91   :  { %3560 = shalt.err (!%p3557_p2)
}
0x1f92   :  { %s3561_s0 = scalar_lea.hbm %s4314_s15, 256 }
0x1f93   :  { %p3562_p3 = scmp.ne.s32.totalorder %s4314_s15, %s3561_s0  ;;  %p3565_p4 = scmp.lt.u32.totalorder %s3561_s0, %s4314_s15 }
0x1f95   :  { %p3567_p5 = pnand %p3565_p4, %p3562_p3 }
0x1f97   :  { %3570 = shalt.err (!%p3567_p5)
}
0x1f98   :  { %2798 = dma.vmem_to_hbm [thread:$0]  %s2793_s25, 256, %s4314_s15, [#allocation4], %s3586_s8, %s3586_s8, %s3587_s18  }
0x1f99   :  { %3577 = dma.done.wait [#allocation4], 256  }
0x1f9a   :  { %3578 = vsyncadd [#allocation4], 4294967040 }
0x1f9b   :  { %2802 = vsyncpa [#allocation3], 1 }
0x1f9c   :  { %2803 = vsyncpa [#allocation6], 1 }
0x1f9d   :  { %2804 = vsyncpa [#allocation9], 1 }
0x1f9e   :  { %2805 = vsyncpa [#allocation4], 1 }

</bundles_post_ra>
